<compile_context>
chip_gen: v5e
topology: v5e:2x2
jax: 0.10.0
libtpu: 0.0.40
codegen_flags: <defaults>
</compile_context>

<pallas_src>
import numpy as np
import jax
import jax.numpy as jnp
from jax.experimental import pallas as pl
from jax.experimental.pallas import tpu as pltpu  # noqa: F401  (TPU backend)

F32 = jnp.float32
LN_EPS = 1e-5
BN_EPS = 1e-5
NEG_SLOPE = 0.2
MASK_NEG = -1e30          # softmax mask kept in f32 (not representable in bf16)


def _ceil_to(x, m):
    return int(-(-int(x) // m) * m)


def _full_spec(shape):
    nd = len(shape)
    return pl.BlockSpec(shape, lambda *_: (0,) * nd)


class _SlabPacker:
    """Row-stacks small 2-D f32 arrays into one lane-padded (R, 128) slab.

    Row offsets are 8-sublane aligned and recorded so the kernel can slice the
    slab with static offsets -> a single input DMA for all packed parameters."""

    def __init__(self, width=128):
        self.width = width
        self._rows = 0
        self._chunks = []
        self.index = {}

    def add(self, name, arr):
        arr = np.asarray(arr, np.float32)
        if arr.ndim == 1:
            arr = arr[None, :]
        assert arr.ndim == 2 and arr.shape[1] <= self.width, (name, arr.shape)
        r0 = self._rows
        self.index[name] = (r0, (int(arr.shape[0]), int(arr.shape[1])))
        self._chunks.append((r0, arr))
        self._rows += _ceil_to(arr.shape[0], 8)

    def finalize(self):
        rows = max(_ceil_to(self._rows, 8), 8)
        slab = np.zeros((rows, self.width), np.float32)
        for r0, a in self._chunks:
            slab[r0:r0 + a.shape[0], :a.shape[1]] = a
        return jnp.asarray(slab), dict(self.index)


# ----------------------------------------------------------------------------
# the fused forward kernel
# ----------------------------------------------------------------------------
def make_fused_kernel(widx, act_idx, cfg):
    """Whole FusionModel forward (eval mode) in one VMEM-resident kernel."""
    T, heads, F1 = cfg['T'], cfg['heads'], cfg['F1']
    N, A, E, OUT, G = cfg['N'], cfg['A'], cfg['E'], cfg['OUT'], cfg['G']
    TH = T * heads
    attn_scale = 1.0 / float(A) ** 0.5
    out_w = cfg['OUT_W']

    def _ln(x, gamma, beta):
        mu = jnp.mean(x, axis=-1, keepdims=True)
        var = jnp.mean((x - mu) ** 2, axis=-1, keepdims=True)
        return (x - mu) * jax.lax.rsqrt(var + LN_EPS) * gamma + beta

    def _bn(x, bn):      # rows: gamma, beta, running_mean, running_var (eval mode)
        return ((x - bn[2:3, :]) * jax.lax.rsqrt(bn[3:4, :] + BN_EPS)
                * bn[0:1, :] + bn[1:2, :])

    def _leaky(x):
        return jnp.where(x > 0, x, NEG_SLOPE * x)

    def _dot(a, b):
        return jnp.dot(a, b, preferred_element_type=F32)

    def kernel(acts_ref, w_ref, g_ref, w13_ref, out_ref):
        def rd(name):                        # static view into the weight slab
            r0, (r, c) = widx[name]
            return w_ref[r0:r0 + r, 0:c]

        def rda(name):                       # static view into the activation slab
            r0, (r, c) = act_idx[name]
            return acts_ref[r0:r0 + r, 0:c]

        # ---- gene encoder (DNABERT fallback; seq-mean done in the XLA wrapper) ----
        g = _dot(rda('e'), rd('wp')) + rd('bp')                          # (B, G)

        # ---- pathway GNN conv1: all (edge-type, head) pairs batched in 3-D --------
        x = rda('px')                                                    # (N, IN)
        if TH > 0:
            w13 = w13_ref[...]                                           # (TH, IN, F1)
            xb = jnp.broadcast_to(x[None, :, :], (TH,) + x.shape)
            hs = jnp.einsum('tni,tif->tnf', xb, w13,
                            preferred_element_type=F32)                  # (TH, N, F1)
            a_d = jnp.sum(hs * rd('adst1')[:, None, :], axis=-1,
                          keepdims=True)                                 # (TH, N, 1)
            a_s = jnp.einsum('tof,tnf->ton', rd('asrc1')[:, None, :], hs,
                             preferred_element_type=F32)                 # (TH, 1, N)
            # escore (folded edge-attr attention) + masked LeakyReLU softmax
            logits = _leaky(g_ref[0:TH] + a_d + a_s) + g_ref[TH:2 * TH]
            m = jnp.max(logits, axis=-1, keepdims=True)
            p = jnp.exp(logits - m)                                      # masked -> 0
            alpha = p / jnp.sum(p, axis=-1, keepdims=True)
            o3 = jnp.einsum('tij,tjf->tif', alpha, hs,
                            preferred_element_type=F32)                  # (TH, N, F1)
            o3 = o3 + rd('bias1')[:, None, :]
            head_parts = []
            for h in range(heads):                                       # tiny static sum
                acc = o3[h]
                for t in range(1, T):
                    acc = acc + o3[t * heads + h]
                head_parts.append(jnp.maximum(acc, 0.0))                 # ReLU
            h2in = jnp.concatenate(head_parts, axis=-1)                  # (N, heads*F1)
        else:
            h2in = jnp.zeros((N, heads * F1), F32)

        # ---- conv2 (heads=1) -> pathway node features ------------------------------
        h2 = _dot(h2in, rd('w2g'))                                       # (N, P)
        a_d2 = jnp.sum(h2 * rd('adst2'), axis=-1, keepdims=True)         # (N, 1)
        a_s2 = jax.lax.dot_general(rd('asrc2'), h2, (((1,), (1,)), ((), ())),
                                   preferred_element_type=F32)           # (1, N)
        l2 = _leaky(g_ref[2 * TH] + a_d2 + a_s2) + g_ref[2 * TH + 1]
        p2 = jnp.exp(l2 - jnp.max(l2, axis=-1, keepdims=True))
        alpha2 = p2 / jnp.sum(p2, axis=-1, keepdims=True)
        nodes = _dot(alpha2, h2) + rd('bias2')                           # (N, P)

        # ---- cross-modal attention (batched over B, fused q|bias and k|v projs) ----
        lnc = rd('lnc')
        qgb = _dot(g, rd('wqgb')) + rd('bqgb')                           # (B, 2A)
        q = _ln(qgb[:, 0:A], lnc[0:1, :], lnc[1:2, :])                   # (B, A)
        gb = qgb[:, A:2 * A]                                             # (B, A)
        kv = _dot(nodes, rd('wkv')) + rd('bkv')                          # (N, 2A)
        k3 = _ln(kv[None, :, 0:A] + 0.1 * gb[:, None, :],
                 lnc[2:3, :], lnc[3:4, :])                               # (B, N, A)
        s = jnp.sum(q[:, None, :] * k3, axis=-1) * attn_scale            # (B, N)
        ps = jnp.exp(s - jnp.max(s, axis=-1, keepdims=True))
        attn = ps / jnp.sum(ps, axis=-1, keepdims=True)                  # (B, N)
        ctx = _dot(attn, kv[:, A:2 * A])                                 # (B, A)

        # ---- disease encoder --------------------------------------------------------
        lnd = rd('lnd')
        xd = rda('dis') * rd('w1d') + rd('b1d')                          # Linear(1, E)
        xd = jnp.maximum(_ln(xd, lnd[0:1, :], lnd[1:2, :]), 0.0)
        xd = jnp.maximum(_dot(xd, rd('w2d')) + rd('b2d'), 0.0)           # (B, E)

        # ---- combined + MLP head (register values only; no ref round-trips) --------
        comb = jnp.concatenate([g, ctx, xd], axis=-1)                    # (B, G+A+E)
        h1 = jnp.maximum(_bn(_dot(comb, rd('wm1')) + rd('bm1'), rd('bn1')), 0.0)
        hm = jnp.maximum(_bn(_dot(h1, rd('wm2')) + rd('bm2'), rd('bn2')), 0.0)
        w3t = rd('wm3t')                                                 # (OUT, d1)
        if OUT == 1:   # VPU multiply + lane reduction beats a 1-lane MXU matmul
            outv = jnp.sum(hm * w3t, axis=-1, keepdims=True) + rd('bm3')
        else:
            outv = jax.lax.dot_general(hm, w3t, (((1,), (1,)), ((), ())),
                                       preferred_element_type=F32) + rd('bm3')

        # ---- single lane-dense packed store: [out | attn | combined | pad] ---------
        pieces = [outv, attn, comb]
        pad = out_w - (OUT + N + G + A + E)
        if pad > 0:
            pieces.append(jnp.zeros((comb.shape[0], pad), F32))
        out_ref[...] = jnp.concatenate(pieces, axis=-1)

    return kernel


# ----------------------------------------------------------------------------
# one-time host prep: graph densification, edge-score folding, slab packing
# ----------------------------------------------------------------------------
def prepare_model(params, n_nodes, edge_index, edge_attr):
    edge_index = np.asarray(edge_index)
    edge_attr = np.asarray(edge_attr, np.float32)
    N = int(n_nodes)
    pw = params['pathway']
    heads = 2
    F1 = int(pw['hidden_channels'])
    P = int(pw['out_channels'])

    def densify(ei, ea):
        adj = np.zeros((N, N), np.float32)
        dattr = np.zeros((N, N, ea.shape[1]), np.float32)
        if ei.shape[1] > 0:
            src, dst = ei[0], ei[1]
            adj[dst, src] = 1.0
            dattr[dst, src] = ea
            fill = ea.mean(axis=0)
        else:
            fill = np.zeros((ea.shape[1],), np.float32)
        idx = np.arange(N)
        adj[idx, idx] = 1.0                      # add_self_loops(fill_value='mean')
        dattr[idx, idx] = fill
        return adj, dattr

    def fold_edge_scores(dattr, gat_p, hds, fout):
        we = np.asarray(gat_p['w_edge']).reshape(hds, fout, -1)          # (H, F, D)
        wh = np.einsum('hf,hfd->hd', np.asarray(gat_p['att_edge']), we)  # (H, D)
        return np.einsum('ijd,hd->hij', dattr, wh).astype(np.float32)    # (H, N, N)

    col0 = edge_attr[:, 0]
    masks = {'activation': col0 > 0.5, 'inhibition': col0 < -0.5}
    masks['undefined'] = ~(masks['activation'] | masks['inhibition'])

    w1_parts, asrc1, adst1, bias1, esc1, mb1 = [], [], [], [], [], []
    for et in ('activation', 'inhibition', 'undefined'):
        m = masks[et]
        if not np.any(m):
            continue                              # conv skipped, matches torch
        gp = pw['conv1'][et]
        adj_t, dattr_t = densify(edge_index[:, m], edge_attr[m, 1:])
        w = np.asarray(gp['w'])                                   # (IN, heads*F1)
        for h in range(heads):
            w1_parts.append(w[:, h * F1:(h + 1) * F1])            # (IN, F1) per head
        asrc1.append(np.asarray(gp['att_src']))                   # (heads, F1)
        adst1.append(np.asarray(gp['att_dst']))
        bias1.append(np.asarray(gp['bias']).reshape(heads, F1))
        esc1.append(fold_edge_scores(dattr_t, gp, heads, F1))     # (heads, N, N)
        mb = np.where(adj_t > 0, 0.0, MASK_NEG).astype(np.float32)
        mb1.append(np.broadcast_to(mb, (heads, N, N)))
    T = len(asrc1)
    TH = T * heads

    adj2, dattr2 = densify(edge_index, edge_attr)
    gp2 = pw['conv2']
    esc2 = fold_edge_scores(dattr2, gp2, 1, P)[0]
    mb2 = np.where(adj2 > 0, 0.0, MASK_NEG).astype(np.float32)

    # graph-constant slab: [esc1(TH) | maskbias1(TH) | esc2 | maskbias2]  (M, N, N)
    parts = []
    if TH:
        parts += [np.concatenate(esc1, 0), np.concatenate(mb1, 0)]
    parts += [esc2[None], mb2[None]]
    gslab = jnp.asarray(np.concatenate(parts, axis=0).astype(np.float32))

    IN = int(np.asarray(pw['conv1']['activation']['w']).shape[0])
    w13 = (np.stack(w1_parts).astype(np.float32) if TH
           else np.zeros((1, IN, F1), np.float32))                # (TH, IN, F1)
    w13 = jnp.asarray(w13)

    # weight slab: one DMA for every remaining parameter (static in-kernel offsets)
    ge, cr, di, ml = params['gene_enc'], params['cross'], params['disease'], params['mlp']
    pk = _SlabPacker(width=128)
    pk.add('wp', ge['wp']); pk.add('bp', ge['bp'])
    if TH:
        pk.add('asrc1', np.concatenate(asrc1, 0))
        pk.add('adst1', np.concatenate(adst1, 0))
        pk.add('bias1', np.concatenate(bias1, 0))
    pk.add('w2g', gp2['w'])
    pk.add('asrc2', gp2['att_src']); pk.add('adst2', gp2['att_dst'])
    pk.add('bias2', gp2['bias'])
    pk.add('wqgb', np.concatenate([np.asarray(cr['wq']), np.asarray(cr['wbias'])], 1))
    pk.add('bqgb', np.concatenate([np.asarray(cr['bq']), np.asarray(cr['bbias'])], 1))
    pk.add('wkv', np.concatenate([np.asarray(cr['wk']), np.asarray(cr['wv'])], 1))
    pk.add('bkv', np.concatenate([np.asarray(cr['bk']), np.asarray(cr['bv'])], 1))
    pk.add('lnc', cr['lnc'])
    pk.add('w1d', di['w1']); pk.add('b1d', di['b1']); pk.add('lnd', di['lnd'])
    pk.add('w2d', di['w2']); pk.add('b2d', di['b2'])
    pk.add('wm1', ml['w1']); pk.add('bm1', ml['b1']); pk.add('bn1', ml['bn1'])
    pk.add('wm2', ml['w2']); pk.add('bm2', ml['b2']); pk.add('bn2', ml['bn2'])
    pk.add('wm3t', np.asarray(ml['w3']).T); pk.add('bm3', ml['b3'])
    wslab, widx = pk.finalize()

    cfg = dict(
        T=T, heads=heads, F1=F1, P=P, IN=IN, N=N,
        H=int(np.asarray(ge['embed_table']).shape[1]),
        G=int(np.asarray(ge['wp']).shape[1]),
        A=int(np.asarray(cr['wq']).shape[1]),
        E=int(np.asarray(di['w2']).shape[1]),
        OUT=int(np.asarray(ml['w3']).shape[1]),
    )
    return wslab, widx, gslab, w13, cfg


# ----------------------------------------------------------------------------
# forward wrapper: one pallas_call (4 packed inputs, 1 packed output)
# ----------------------------------------------------------------------------
def make_fusion_forward(params, wslab, widx, gslab, w13, cfg):
    embed_table = jnp.asarray(params['gene_enc']['embed_table'], F32)
    N, IN, H = cfg['N'], cfg['IN'], cfg['H']
    G, A, E, OUT = cfg['G'], cfg['A'], cfg['E'], cfg['OUT']

    @jax.jit
    def forward(gene_seq, pathway_x, disease_counts):
        B = gene_seq.shape[0]

        # XLA glue: data-dependent embedding gather + sequence mean (DNABERT fallback).
        # TODO(synk): pretrained DNABERT-2 transformer is not reproducible here.
        e = jnp.take(embed_table, gene_seq, axis=0).mean(axis=1)          # (B, H)

        # pack the three activation tensors into one lane-padded slab -> single DMA
        r_e, r_px = 0, _ceil_to(B, 8)
        r_dis = r_px + _ceil_to(N, 8)
        rows = r_dis + _ceil_to(B, 8)
        act_idx = {'e': (r_e, (B, H)), 'px': (r_px, (N, IN)), 'dis': (r_dis, (B, 1))}
        acts = jnp.zeros((rows, 128), F32)
        acts = acts.at[r_e:r_e + B, 0:H].set(e.astype(F32))
        acts = acts.at[r_px:r_px + N, 0:IN].set(pathway_x.astype(F32))
        acts = acts.at[r_dis:r_dis + B, 0:1].set(disease_counts.astype(F32))

        out_w = _ceil_to(OUT + N + G + A + E, 128)
        kernel = make_fused_kernel(widx, act_idx, dict(cfg, B=B, OUT_W=out_w))

        packed = pl.pallas_call(
            kernel,
            out_shape=jax.ShapeDtypeStruct((B, out_w), F32),
            in_specs=[_full_spec(acts.shape), _full_spec(wslab.shape),
                      _full_spec(gslab.shape), _full_spec(w13.shape)],
            out_specs=_full_spec((B, out_w)),
        )(acts, wslab, gslab, w13)

        output = packed[:, 0:OUT]
        attn = packed[:, OUT:OUT + N]
        combined = packed[:, OUT + N:OUT + N + G + A + E]
        return output, attn, combined

    return forward


# ----------------------------------------------------------------------------
# deterministic parameter construction (kernel-ready layouts: weights are (K, N))
# ----------------------------------------------------------------------------
def build_params(key, *, vocab, dna_hidden, gene_dim, pathway_dim,
                 pathway_in, gnn_hidden, edge_dim, disease_emb_dim,
                 hidden_dims, output_dim):
    keys = iter(jax.random.split(key, 64))
    nk = lambda: next(keys)

    def lin(in_d, out_d, std=None):
        s = std if std is not None else 1.0 / np.sqrt(max(in_d, 1))
        w = jax.random.normal(nk(), (in_d, out_d), F32) * s       # pre-transposed (K, N)
        b = jax.random.normal(nk(), (1, out_d), F32) * 0.01
        return w, b

    def gat(in_d, out_d, heads, e_dim):
        return {
            'w': jax.random.normal(nk(), (in_d, heads * out_d), F32) * (1.0 / np.sqrt(in_d)),
            'att_src': jax.random.normal(nk(), (heads, out_d), F32) * 0.1,
            'att_dst': jax.random.normal(nk(), (heads, out_d), F32) * 0.1,
            'att_edge': jax.random.normal(nk(), (heads, out_d), F32) * 0.1,
            'w_edge': jax.random.normal(nk(), (heads * out_d, e_dim), F32) * 0.1,
            'bias': jnp.zeros((1, heads * out_d), F32),
        }

    # gene encoder (fallback DNABERT path)
    embed_table = jax.random.normal(nk(), (vocab, dna_hidden), F32) * 0.02
    wp, bp = lin(dna_hidden, gene_dim)
    gene_enc = {'embed_table': embed_table, 'wp': wp, 'bp': bp}

    # pathway GNN
    pathway = {'hidden_channels': gnn_hidden, 'out_channels': pathway_dim,
               'conv1': {et: gat(pathway_in, gnn_hidden, 2, edge_dim - 1)
                         for et in ('activation', 'inhibition', 'undefined')},
               'conv2': gat(gnn_hidden * 2, pathway_dim, 1, edge_dim)}

    # cross-modal attention
    A = gene_dim
    xav = lambda i, o: np.sqrt(2.0 / (i + o))
    wq, bq = lin(gene_dim, A, std=xav(gene_dim, A))
    wk, bk = lin(pathway_dim, A, std=xav(pathway_dim, A))
    wv, bv = lin(pathway_dim, A)
    wbias, bbias = lin(gene_dim, A)
    lnc = jnp.stack([jnp.ones((A,), F32), jnp.zeros((A,), F32),
                     jnp.ones((A,), F32), jnp.zeros((A,), F32)], axis=0)   # (4, A)
    cross = {'wq': wq, 'bq': bq, 'wk': wk, 'bk': bk, 'wv': wv, 'bv': bv,
             'wbias': wbias, 'bbias': bbias, 'lnc': lnc}

    # disease encoder
    w1, b1 = lin(1, disease_emb_dim)
    w2, b2 = lin(disease_emb_dim, disease_emb_dim)
    lnd = jnp.stack([jnp.ones((disease_emb_dim,), F32),
                     jnp.zeros((disease_emb_dim,), F32)], axis=0)          # (2, E)
    disease = {'w1': w1, 'b1': b1, 'lnd': lnd, 'w2': w2, 'b2': b2}

    # MLP head (BatchNorm1d in eval mode with default running stats)
    mlp_in = gene_dim + gene_dim + disease_emb_dim
    d0, d1 = hidden_dims
    w1m, b1m = lin(mlp_in, d0)
    w2m, b2m = lin(d0, d1)
    w3m, b3m = lin(d1, output_dim)
    bn = lambda d: jnp.stack([jnp.ones((d,), F32), jnp.zeros((d,), F32),
                              jnp.zeros((d,), F32), jnp.ones((d,), F32)], axis=0)
    mlp = {'w1': w1m, 'b1': b1m, 'bn1': bn(d0),
           'w2': w2m, 'b2': b2m, 'bn2': bn(d1),
           'w3': w3m, 'b3': b3m}

    return {'gene_enc': gene_enc, 'pathway': pathway, 'cross': cross,
            'disease': disease, 'mlp': mlp}


# ----------------------------------------------------------------------------
if __name__ == "__main__":
    # small shapes consistent with the module's forward
    B, S, VOCAB, DNA_H = 2, 16, 64, 32
    GENE_DIM = PATHWAY_DIM = 32          # attn_dim = gene_dim
    N_NODES, PATHWAY_IN, GNN_HIDDEN, EDGE_DIM = 8, 4, 8, 2
    DISEASE_EMB = 8
    HIDDEN_DIMS, OUTPUT_DIM = [32, 16], 1

    key = jax.random.PRNGKey(0)
    k_par, k_seq, k_px, k_dis = jax.random.split(key, 4)

    params = build_params(k_par, vocab=VOCAB, dna_hidden=DNA_H,
                          gene_dim=GENE_DIM, pathway_dim=PATHWAY_DIM,
                          pathway_in=PATHWAY_IN, gnn_hidden=GNN_HIDDEN,
                          edge_dim=EDGE_DIM, disease_emb_dim=DISEASE_EMB,
                          hidden_dims=HIDDEN_DIMS, output_dim=OUTPUT_DIM)

    # inputs
    gene_seq = jax.random.randint(k_seq, (B, S), 1, VOCAB, dtype=jnp.int32)
    pathway_x = jax.random.normal(k_px, (N_NODES, PATHWAY_IN), F32)
    disease_counts = jax.random.uniform(k_dis, (B, 1), F32) * 5.0

    # deterministic synthetic pathway graph (no duplicate edges, no self-loops)
    src = np.array([0, 1, 2, 3, 4, 5, 6, 7, 0, 2, 4, 6, 1, 3, 5, 7], np.int32)
    dst = np.array([1, 2, 3, 4, 5, 6, 7, 0, 4, 6, 0, 2, 5, 7, 1, 3], np.int32)
    edge_index = np.stack([src, dst])                              # (2, 16)
    rng = np.random.RandomState(0)
    type_col = np.resize(np.array([1.0, -1.0, 0.0], np.float32), 16)
    weight_col = rng.uniform(0.1, 1.0, size=16).astype(np.float32)
    edge_attr = np.stack([type_col, weight_col], axis=1)           # (16, 2)

    # one-time host prep (graph densification + edge folding + slab packing)
    wslab, widx, gslab, w13, cfg = prepare_model(params, N_NODES, edge_index, edge_attr)
    forward = make_fusion_forward(params, wslab, widx, gslab, w13, cfg)

    output, attn_weights, combined = forward(gene_seq, pathway_x, disease_counts)

    jax.block_until_ready((output, attn_weights, combined))
    assert output.shape == (B, OUTPUT_DIM)
    assert attn_weights.shape == (B, N_NODES)
    assert combined.shape == (B, 2 * GENE_DIM + DISEASE_EMB)
    assert bool(jnp.all(jnp.isfinite(output)))
    assert bool(jnp.all(jnp.isfinite(attn_weights)))
    assert bool(jnp.all(jnp.isfinite(combined)))
    # attention rows must be a valid softmax
    assert bool(jnp.allclose(jnp.sum(attn_weights, axis=-1), 1.0, atol=1e-4))
    print("KERNEL_OK")
</pallas_src>

<mosaic_0001>
module attributes {stable_mosaic.version = 11 : i64} {
  func.func @kernel(%arg0: memref<24x128xf32, #tpu.memory_space<vmem>>, %arg1: memref<384x128xf32, #tpu.memory_space<vmem>>, %arg2: memref<14x8x8xf32, #tpu.memory_space<vmem>>, %arg3: memref<6x4x8xf32, #tpu.memory_space<vmem>>, %arg4: memref<2x128xf32, #tpu.memory_space<vmem>>) attributes {dimension_semantics = [], scalar_prefetch = 0 : i64, scratch_operands = 0 : i64, tpu.core_type = #tpu.core_type<tc>} {
    %c0 = arith.constant 0 : index
    %c0_0 = arith.constant 0 : index
    %0 = vector.load %arg0[%c0, %c0_0] : memref<24x128xf32, #tpu.memory_space<vmem>>, vector<2x32xf32>
    %c0_1 = arith.constant 0 : index
    %c0_2 = arith.constant 0 : index
    %1 = vector.load %arg1[%c0_1, %c0_2] : memref<384x128xf32, #tpu.memory_space<vmem>>, vector<32x32xf32>
    %cst = arith.constant dense<0.000000e+00> : vector<2x32xf32>
    %2 = tpu.matmul %0, %1, %cst {dimension_numbers = #tpu.dot_dimension_numbers<[1], [0], [0], [1], [0, 0, 1, 1], [], []>} : vector<2x32xf32>, vector<32x32xf32>, vector<2x32xf32> -> vector<2x32xf32>
    %c32 = arith.constant 32 : index
    %c0_3 = arith.constant 0 : index
    %3 = vector.load %arg1[%c32, %c0_3] : memref<384x128xf32, #tpu.memory_space<vmem>>, vector<1x32xf32>
    %4 = vector.broadcast %3 : vector<1x32xf32> to vector<2x32xf32>
    %5 = arith.addf %2, %4 : vector<2x32xf32>
    %c8 = arith.constant 8 : index
    %c0_4 = arith.constant 0 : index
    %6 = vector.load %arg0[%c8, %c0_4] : memref<24x128xf32, #tpu.memory_space<vmem>>, vector<8x4xf32>
    %c0_5 = arith.constant 0 : index
    %c0_6 = arith.constant 0 : index
    %c0_7 = arith.constant 0 : index
    %7 = vector.load %arg3[%c0_5, %c0_6, %c0_7] : memref<6x4x8xf32, #tpu.memory_space<vmem>>, vector<6x4x8xf32>
    %8 = vector.shape_cast %6 : vector<8x4xf32> to vector<1x8x4xf32>
    %9 = vector.shape_cast %8 : vector<1x8x4xf32> to vector<1x8x4xf32>
    %10 = vector.broadcast %9 : vector<1x8x4xf32> to vector<6x8x4xf32>
    "tpu.trace_start"() <{level = 10 : i32, message = "tni,tif->tnf"}> : () -> ()
    %cst_8 = arith.constant dense<0.000000e+00> : vector<6x8x8xf32>
    %11 = tpu.matmul %10, %7, %cst_8 {dimension_numbers = #tpu.dot_dimension_numbers<[2], [1], [1], [2], [0, 0, 0, 1, 1, 2], [0], [0]>} : vector<6x8x4xf32>, vector<6x4x8xf32>, vector<6x8x8xf32> -> vector<6x8x8xf32>
    "tpu.trace_stop"() : () -> ()
    %c48 = arith.constant 48 : index
    %c0_9 = arith.constant 0 : index
    %12 = vector.load %arg1[%c48, %c0_9] : memref<384x128xf32, #tpu.memory_space<vmem>>, vector<6x8xf32>
    %13 = vector.shape_cast %12 : vector<6x8xf32> to vector<6x1x8xf32>
    %14 = vector.broadcast %13 : vector<6x1x8xf32> to vector<6x8x8xf32>
    %15 = arith.mulf %11, %14 : vector<6x8x8xf32>
    %cst_10 = arith.constant dense<0.000000e+00> : vector<6x8xf32>
    %16 = vector.multi_reduction <add>, %15, %cst_10 [2] : vector<6x8x8xf32> to vector<6x8xf32>
    %17 = vector.shape_cast %16 : vector<6x8xf32> to vector<6x8x1xf32>
    %c40 = arith.constant 40 : index
    %c0_11 = arith.constant 0 : index
    %18 = vector.load %arg1[%c40, %c0_11] : memref<384x128xf32, #tpu.memory_space<vmem>>, vector<6x8xf32>
    %19 = vector.shape_cast %18 : vector<6x8xf32> to vector<6x1x8xf32>
    "tpu.trace_start"() <{level = 10 : i32, message = "tof,tnf->ton"}> : () -> ()
    %cst_12 = arith.constant dense<0.000000e+00> : vector<6x1x8xf32>
    %20 = tpu.matmul %19, %11, %cst_12 {dimension_numbers = #tpu.dot_dimension_numbers<[2], [2], [1], [1], [0, 0, 0, 1, 1, 1], [0], [0]>} : vector<6x1x8xf32>, vector<6x8x8xf32>, vector<6x1x8xf32> -> vector<6x1x8xf32>
    "tpu.trace_stop"() : () -> ()
    %c0_13 = arith.constant 0 : index
    %c0_14 = arith.constant 0 : index
    %c0_15 = arith.constant 0 : index
    %21 = vector.load %arg2[%c0_13, %c0_14, %c0_15] : memref<14x8x8xf32, #tpu.memory_space<vmem>>, vector<6x8x8xf32>
    %22 = vector.broadcast %17 : vector<6x8x1xf32> to vector<6x8x8xf32>
    %23 = arith.addf %21, %22 : vector<6x8x8xf32>
    %24 = vector.broadcast %20 : vector<6x1x8xf32> to vector<6x8x8xf32>
    %25 = arith.addf %23, %24 : vector<6x8x8xf32>
    %cst_16 = arith.constant 0.000000e+00 : f32
    %26 = vector.broadcast %cst_16 : f32 to vector<6x8x8xf32>
    %27 = arith.cmpf ogt, %25, %26 : vector<6x8x8xf32>
    %cst_17 = arith.constant 2.000000e-01 : f32
    %28 = vector.broadcast %cst_17 : f32 to vector<6x8x8xf32>
    %29 = arith.mulf %28, %25 : vector<6x8x8xf32>
    %30 = arith.select %27, %25, %29 : vector<6x8x8xi1>, vector<6x8x8xf32>
    %c6 = arith.constant 6 : index
    %c0_18 = arith.constant 0 : index
    %c0_19 = arith.constant 0 : index
    %31 = vector.load %arg2[%c6, %c0_18, %c0_19] : memref<14x8x8xf32, #tpu.memory_space<vmem>>, vector<6x8x8xf32>
    %32 = arith.addf %30, %31 : vector<6x8x8xf32>
    %cst_20 = arith.constant dense<0xFF800000> : vector<6x8xf32>
    %33 = vector.multi_reduction <maximumf>, %32, %cst_20 [2] : vector<6x8x8xf32> to vector<6x8xf32>
    %34 = vector.shape_cast %33 : vector<6x8xf32> to vector<6x8x1xf32>
    %35 = vector.broadcast %34 : vector<6x8x1xf32> to vector<6x8x8xf32>
    %36 = arith.subf %32, %35 : vector<6x8x8xf32>
    %37 = math.exp %36 : vector<6x8x8xf32>
    %cst_21 = arith.constant dense<0.000000e+00> : vector<6x8xf32>
    %38 = vector.multi_reduction <add>, %37, %cst_21 [2] : vector<6x8x8xf32> to vector<6x8xf32>
    %39 = vector.shape_cast %38 : vector<6x8xf32> to vector<6x8x1xf32>
    %40 = vector.broadcast %39 : vector<6x8x1xf32> to vector<6x8x8xf32>
    %41 = arith.divf %37, %40 : vector<6x8x8xf32>
    "tpu.trace_start"() <{level = 10 : i32, message = "tij,tjf->tif"}> : () -> ()
    %cst_22 = arith.constant dense<0.000000e+00> : vector<6x8x8xf32>
    %42 = tpu.matmul %41, %11, %cst_22 {dimension_numbers = #tpu.dot_dimension_numbers<[2], [1], [1], [2], [0, 0, 0, 1, 1, 2], [0], [0]>} : vector<6x8x8xf32>, vector<6x8x8xf32>, vector<6x8x8xf32> -> vector<6x8x8xf32>
    "tpu.trace_stop"() : () -> ()
    %c56 = arith.constant 56 : index
    %c0_23 = arith.constant 0 : index
    %43 = vector.load %arg1[%c56, %c0_23] : memref<384x128xf32, #tpu.memory_space<vmem>>, vector<6x8xf32>
    %44 = vector.shape_cast %43 : vector<6x8xf32> to vector<6x1x8xf32>
    %45 = vector.broadcast %44 : vector<6x1x8xf32> to vector<6x8x8xf32>
    %46 = arith.addf %42, %45 : vector<6x8x8xf32>
    %47 = vector.extract_strided_slice %46 {offsets = [0, 0, 0], sizes = [1, 8, 8], strides = [1, 1, 1]} : vector<6x8x8xf32> to vector<1x8x8xf32>
    %48 = vector.shape_cast %47 : vector<1x8x8xf32> to vector<8x8xf32>
    %49 = vector.extract_strided_slice %46 {offsets = [2, 0, 0], sizes = [1, 8, 8], strides = [1, 1, 1]} : vector<6x8x8xf32> to vector<1x8x8xf32>
    %50 = vector.shape_cast %49 : vector<1x8x8xf32> to vector<8x8xf32>
    %51 = arith.addf %48, %50 : vector<8x8xf32>
    %52 = vector.extract_strided_slice %46 {offsets = [4, 0, 0], sizes = [1, 8, 8], strides = [1, 1, 1]} : vector<6x8x8xf32> to vector<1x8x8xf32>
    %53 = vector.shape_cast %52 : vector<1x8x8xf32> to vector<8x8xf32>
    %54 = arith.addf %51, %53 : vector<8x8xf32>
    %cst_24 = arith.constant 0.000000e+00 : f32
    %55 = vector.broadcast %cst_24 : f32 to vector<8x8xf32>
    %56 = arith.maximumf %54, %55 : vector<8x8xf32>
    %57 = vector.extract_strided_slice %46 {offsets = [1, 0, 0], sizes = [1, 8, 8], strides = [1, 1, 1]} : vector<6x8x8xf32> to vector<1x8x8xf32>
    %58 = vector.shape_cast %57 : vector<1x8x8xf32> to vector<8x8xf32>
    %59 = vector.extract_strided_slice %46 {offsets = [3, 0, 0], sizes = [1, 8, 8], strides = [1, 1, 1]} : vector<6x8x8xf32> to vector<1x8x8xf32>
    %60 = vector.shape_cast %59 : vector<1x8x8xf32> to vector<8x8xf32>
    %61 = arith.addf %58, %60 : vector<8x8xf32>
    %62 = vector.extract_strided_slice %46 {offsets = [5, 0, 0], sizes = [1, 8, 8], strides = [1, 1, 1]} : vector<6x8x8xf32> to vector<1x8x8xf32>
    %63 = vector.shape_cast %62 : vector<1x8x8xf32> to vector<8x8xf32>
    %64 = arith.addf %61, %63 : vector<8x8xf32>
    %cst_25 = arith.constant 0.000000e+00 : f32
    %65 = vector.broadcast %cst_25 : f32 to vector<8x8xf32>
    %66 = arith.maximumf %64, %65 : vector<8x8xf32>
    %67 = tpu.concatenate %56, %66 in 1 : vector<8x8xf32>, vector<8x8xf32> -> vector<8x16xf32>
    %c64 = arith.constant 64 : index
    %c0_26 = arith.constant 0 : index
    %68 = vector.load %arg1[%c64, %c0_26] : memref<384x128xf32, #tpu.memory_space<vmem>>, vector<16x32xf32>
    %cst_27 = arith.constant dense<0.000000e+00> : vector<8x32xf32>
    %69 = tpu.matmul %67, %68, %cst_27 {dimension_numbers = #tpu.dot_dimension_numbers<[1], [0], [0], [1], [0, 0, 1, 1], [], []>} : vector<8x16xf32>, vector<16x32xf32>, vector<8x32xf32> -> vector<8x32xf32>
    %c88 = arith.constant 88 : index
    %c0_28 = arith.constant 0 : index
    %70 = vector.load %arg1[%c88, %c0_28] : memref<384x128xf32, #tpu.memory_space<vmem>>, vector<1x32xf32>
    %71 = vector.broadcast %70 : vector<1x32xf32> to vector<8x32xf32>
    %72 = arith.mulf %69, %71 : vector<8x32xf32>
    %cst_29 = arith.constant dense<0.000000e+00> : vector<8xf32>
    %73 = vector.multi_reduction <add>, %72, %cst_29 [1] : vector<8x32xf32> to vector<8xf32>
    %74 = vector.shape_cast %73 : vector<8xf32> to vector<8x1xf32>
    %c80 = arith.constant 80 : index
    %c0_30 = arith.constant 0 : index
    %75 = vector.load %arg1[%c80, %c0_30] : memref<384x128xf32, #tpu.memory_space<vmem>>, vector<1x32xf32>
    %cst_31 = arith.constant dense<0.000000e+00> : vector<1x8xf32>
    %76 = tpu.matmul %75, %69, %cst_31 {dimension_numbers = #tpu.dot_dimension_numbers<[1], [1], [0], [0], [0, 0, 1, 0], [], []>} : vector<1x32xf32>, vector<8x32xf32>, vector<1x8xf32> -> vector<1x8xf32>
    %c12 = arith.constant 12 : index
    %c0_32 = arith.constant 0 : index
    %c0_33 = arith.constant 0 : index
    %77 = vector.load %arg2[%c12, %c0_32, %c0_33] : memref<14x8x8xf32, #tpu.memory_space<vmem>>, vector<1x8x8xf32>
    %78 = vector.shape_cast %77 : vector<1x8x8xf32> to vector<8x8xf32>
    %79 = vector.broadcast %74 : vector<8x1xf32> to vector<8x8xf32>
    %80 = arith.addf %78, %79 : vector<8x8xf32>
    %81 = vector.broadcast %76 : vector<1x8xf32> to vector<8x8xf32>
    %82 = arith.addf %80, %81 : vector<8x8xf32>
    %cst_34 = arith.constant 0.000000e+00 : f32
    %83 = vector.broadcast %cst_34 : f32 to vector<8x8xf32>
    %84 = arith.cmpf ogt, %82, %83 : vector<8x8xf32>
    %cst_35 = arith.constant 2.000000e-01 : f32
    %85 = vector.broadcast %cst_35 : f32 to vector<8x8xf32>
    %86 = arith.mulf %85, %82 : vector<8x8xf32>
    %87 = arith.select %84, %82, %86 : vector<8x8xi1>, vector<8x8xf32>
    %c13 = arith.constant 13 : index
    %c0_36 = arith.constant 0 : index
    %c0_37 = arith.constant 0 : index
    %88 = vector.load %arg2[%c13, %c0_36, %c0_37] : memref<14x8x8xf32, #tpu.memory_space<vmem>>, vector<1x8x8xf32>
    %89 = vector.shape_cast %88 : vector<1x8x8xf32> to vector<8x8xf32>
    %90 = arith.addf %87, %89 : vector<8x8xf32>
    %cst_38 = arith.constant dense<0xFF800000> : vector<8xf32>
    %91 = vector.multi_reduction <maximumf>, %90, %cst_38 [1] : vector<8x8xf32> to vector<8xf32>
    %92 = vector.shape_cast %91 : vector<8xf32> to vector<8x1xf32>
    %93 = vector.broadcast %92 : vector<8x1xf32> to vector<8x8xf32>
    %94 = arith.subf %90, %93 : vector<8x8xf32>
    %95 = math.exp %94 : vector<8x8xf32>
    %cst_39 = arith.constant dense<0.000000e+00> : vector<8xf32>
    %96 = vector.multi_reduction <add>, %95, %cst_39 [1] : vector<8x8xf32> to vector<8xf32>
    %97 = vector.shape_cast %96 : vector<8xf32> to vector<8x1xf32>
    %98 = vector.broadcast %97 : vector<8x1xf32> to vector<8x8xf32>
    %99 = arith.divf %95, %98 : vector<8x8xf32>
    %cst_40 = arith.constant dense<0.000000e+00> : vector<8x32xf32>
    %100 = tpu.matmul %99, %69, %cst_40 {dimension_numbers = #tpu.dot_dimension_numbers<[1], [0], [0], [1], [0, 0, 1, 1], [], []>} : vector<8x8xf32>, vector<8x32xf32>, vector<8x32xf32> -> vector<8x32xf32>
    %c96 = arith.constant 96 : index
    %c0_41 = arith.constant 0 : index
    %101 = vector.load %arg1[%c96, %c0_41] : memref<384x128xf32, #tpu.memory_space<vmem>>, vector<1x32xf32>
    %102 = vector.broadcast %101 : vector<1x32xf32> to vector<8x32xf32>
    %103 = arith.addf %100, %102 : vector<8x32xf32>
    %c184 = arith.constant 184 : index
    %c0_42 = arith.constant 0 : index
    %104 = vector.load %arg1[%c184, %c0_42] : memref<384x128xf32, #tpu.memory_space<vmem>>, vector<4x32xf32>
    %c104 = arith.constant 104 : index
    %c0_43 = arith.constant 0 : index
    %105 = vector.load %arg1[%c104, %c0_43] : memref<384x128xf32, #tpu.memory_space<vmem>>, vector<32x64xf32>
    %cst_44 = arith.constant dense<0.000000e+00> : vector<2x64xf32>
    %106 = tpu.matmul %5, %105, %cst_44 {dimension_numbers = #tpu.dot_dimension_numbers<[1], [0], [0], [1], [0, 0, 1, 1], [], []>} : vector<2x32xf32>, vector<32x64xf32>, vector<2x64xf32> -> vector<2x64xf32>
    %c136 = arith.constant 136 : index
    %c0_45 = arith.constant 0 : index
    %107 = vector.load %arg1[%c136, %c0_45] : memref<384x128xf32, #tpu.memory_space<vmem>>, vector<1x64xf32>
    %108 = vector.broadcast %107 : vector<1x64xf32> to vector<2x64xf32>
    %109 = arith.addf %106, %108 : vector<2x64xf32>
    %110 = vector.extract_strided_slice %109 {offsets = [0, 0], sizes = [2, 32], strides = [1, 1]} : vector<2x64xf32> to vector<2x32xf32>
    %111 = vector.extract_strided_slice %104 {offsets = [0, 0], sizes = [1, 32], strides = [1, 1]} : vector<4x32xf32> to vector<1x32xf32>
    %112 = vector.extract_strided_slice %104 {offsets = [1, 0], sizes = [1, 32], strides = [1, 1]} : vector<4x32xf32> to vector<1x32xf32>
    %cst_46 = arith.constant dense<0.000000e+00> : vector<2xf32>
    %113 = vector.multi_reduction <add>, %110, %cst_46 [1] : vector<2x32xf32> to vector<2xf32>
    %114 = vector.shape_cast %113 : vector<2xf32> to vector<2x1xf32>
    %cst_47 = arith.constant 3.200000e+01 : f32
    %115 = vector.broadcast %cst_47 : f32 to vector<2x1xf32>
    %116 = arith.divf %114, %115 : vector<2x1xf32>
    %117 = vector.broadcast %116 : vector<2x1xf32> to vector<2x32xf32>
    %118 = arith.subf %110, %117 : vector<2x32xf32>
    %119 = arith.mulf %118, %118 : vector<2x32xf32>
    %cst_48 = arith.constant dense<0.000000e+00> : vector<2xf32>
    %120 = vector.multi_reduction <add>, %119, %cst_48 [1] : vector<2x32xf32> to vector<2xf32>
    %121 = vector.shape_cast %120 : vector<2xf32> to vector<2x1xf32>
    %cst_49 = arith.constant 3.200000e+01 : f32
    %122 = vector.broadcast %cst_49 : f32 to vector<2x1xf32>
    %123 = arith.divf %121, %122 : vector<2x1xf32>
    %124 = vector.broadcast %116 : vector<2x1xf32> to vector<2x32xf32>
    %125 = arith.subf %110, %124 : vector<2x32xf32>
    %cst_50 = arith.constant 9.99999974E-6 : f32
    %126 = vector.broadcast %cst_50 : f32 to vector<2x1xf32>
    %127 = arith.addf %123, %126 : vector<2x1xf32>
    %128 = math.rsqrt %127 : vector<2x1xf32>
    %129 = vector.broadcast %128 : vector<2x1xf32> to vector<2x32xf32>
    %130 = arith.mulf %125, %129 : vector<2x32xf32>
    %131 = vector.broadcast %111 : vector<1x32xf32> to vector<2x32xf32>
    %132 = arith.mulf %130, %131 : vector<2x32xf32>
    %133 = vector.broadcast %112 : vector<1x32xf32> to vector<2x32xf32>
    %134 = arith.addf %132, %133 : vector<2x32xf32>
    %135 = vector.extract_strided_slice %109 {offsets = [0, 32], sizes = [2, 32], strides = [1, 1]} : vector<2x64xf32> to vector<2x32xf32>
    %c144 = arith.constant 144 : index
    %c0_51 = arith.constant 0 : index
    %136 = vector.load %arg1[%c144, %c0_51] : memref<384x128xf32, #tpu.memory_space<vmem>>, vector<32x64xf32>
    %cst_52 = arith.constant dense<0.000000e+00> : vector<8x64xf32>
    %137 = tpu.matmul %103, %136, %cst_52 {dimension_numbers = #tpu.dot_dimension_numbers<[1], [0], [0], [1], [0, 0, 1, 1], [], []>} : vector<8x32xf32>, vector<32x64xf32>, vector<8x64xf32> -> vector<8x64xf32>
    %c176 = arith.constant 176 : index
    %c0_53 = arith.constant 0 : index
    %138 = vector.load %arg1[%c176, %c0_53] : memref<384x128xf32, #tpu.memory_space<vmem>>, vector<1x64xf32>
    %139 = vector.broadcast %138 : vector<1x64xf32> to vector<8x64xf32>
    %140 = arith.addf %137, %139 : vector<8x64xf32>
    %141 = vector.extract_strided_slice %140 {offsets = [0, 0], sizes = [8, 32], strides = [1, 1]} : vector<8x64xf32> to vector<8x32xf32>
    %142 = vector.shape_cast %141 : vector<8x32xf32> to vector<1x8x32xf32>
    %143 = vector.shape_cast %135 : vector<2x32xf32> to vector<2x1x32xf32>
    %cst_54 = arith.constant 1.000000e-01 : f32
    %144 = vector.broadcast %cst_54 : f32 to vector<2x1x32xf32>
    %145 = arith.mulf %144, %143 : vector<2x1x32xf32>
    %146 = vector.broadcast %142 : vector<1x8x32xf32> to vector<2x8x32xf32>
    %147 = vector.broadcast %145 : vector<2x1x32xf32> to vector<2x8x32xf32>
    %148 = arith.addf %146, %147 : vector<2x8x32xf32>
    %149 = vector.extract_strided_slice %104 {offsets = [2, 0], sizes = [1, 32], strides = [1, 1]} : vector<4x32xf32> to vector<1x32xf32>
    %150 = vector.extract_strided_slice %104 {offsets = [3, 0], sizes = [1, 32], strides = [1, 1]} : vector<4x32xf32> to vector<1x32xf32>
    %cst_55 = arith.constant dense<0.000000e+00> : vector<2x8xf32>
    %151 = vector.multi_reduction <add>, %148, %cst_55 [2] : vector<2x8x32xf32> to vector<2x8xf32>
    %152 = vector.shape_cast %151 : vector<2x8xf32> to vector<2x8x1xf32>
    %cst_56 = arith.constant 3.200000e+01 : f32
    %153 = vector.broadcast %cst_56 : f32 to vector<2x8x1xf32>
    %154 = arith.divf %152, %153 : vector<2x8x1xf32>
    %155 = vector.broadcast %154 : vector<2x8x1xf32> to vector<2x8x32xf32>
    %156 = arith.subf %148, %155 : vector<2x8x32xf32>
    %157 = arith.mulf %156, %156 : vector<2x8x32xf32>
    %cst_57 = arith.constant dense<0.000000e+00> : vector<2x8xf32>
    %158 = vector.multi_reduction <add>, %157, %cst_57 [2] : vector<2x8x32xf32> to vector<2x8xf32>
    %159 = vector.shape_cast %158 : vector<2x8xf32> to vector<2x8x1xf32>
    %cst_58 = arith.constant 3.200000e+01 : f32
    %160 = vector.broadcast %cst_58 : f32 to vector<2x8x1xf32>
    %161 = arith.divf %159, %160 : vector<2x8x1xf32>
    %162 = vector.broadcast %154 : vector<2x8x1xf32> to vector<2x8x32xf32>
    %163 = arith.subf %148, %162 : vector<2x8x32xf32>
    %cst_59 = arith.constant 9.99999974E-6 : f32
    %164 = vector.broadcast %cst_59 : f32 to vector<2x8x1xf32>
    %165 = arith.addf %161, %164 : vector<2x8x1xf32>
    %166 = math.rsqrt %165 : vector<2x8x1xf32>
    %167 = vector.broadcast %166 : vector<2x8x1xf32> to vector<2x8x32xf32>
    %168 = arith.mulf %163, %167 : vector<2x8x32xf32>
    %169 = vector.shape_cast %149 : vector<1x32xf32> to vector<1x1x32xf32>
    %170 = vector.broadcast %169 : vector<1x1x32xf32> to vector<2x8x32xf32>
    %171 = arith.mulf %168, %170 : vector<2x8x32xf32>
    %172 = vector.shape_cast %150 : vector<1x32xf32> to vector<1x1x32xf32>
    %173 = vector.broadcast %172 : vector<1x1x32xf32> to vector<2x8x32xf32>
    %174 = arith.addf %171, %173 : vector<2x8x32xf32>
    %175 = vector.shape_cast %134 : vector<2x32xf32> to vector<2x1x32xf32>
    %176 = vector.broadcast %175 : vector<2x1x32xf32> to vector<2x8x32xf32>
    %177 = arith.mulf %176, %174 : vector<2x8x32xf32>
    %cst_60 = arith.constant dense<0.000000e+00> : vector<2x8xf32>
    %178 = vector.multi_reduction <add>, %177, %cst_60 [2] : vector<2x8x32xf32> to vector<2x8xf32>
    %cst_61 = arith.constant 0.176776692 : f32
    %179 = vector.broadcast %cst_61 : f32 to vector<2x8xf32>
    %180 = arith.mulf %178, %179 : vector<2x8xf32>
    %cst_62 = arith.constant dense<0xFF800000> : vector<2xf32>
    %181 = vector.multi_reduction <maximumf>, %180, %cst_62 [1] : vector<2x8xf32> to vector<2xf32>
    %182 = vector.shape_cast %181 : vector<2xf32> to vector<2x1xf32>
    %183 = vector.broadcast %182 : vector<2x1xf32> to vector<2x8xf32>
    %184 = arith.subf %180, %183 : vector<2x8xf32>
    %185 = math.exp %184 : vector<2x8xf32>
    %cst_63 = arith.constant dense<0.000000e+00> : vector<2xf32>
    %186 = vector.multi_reduction <add>, %185, %cst_63 [1] : vector<2x8xf32> to vector<2xf32>
    %187 = vector.shape_cast %186 : vector<2xf32> to vector<2x1xf32>
    %188 = vector.broadcast %187 : vector<2x1xf32> to vector<2x8xf32>
    %189 = arith.divf %185, %188 : vector<2x8xf32>
    %190 = vector.extract_strided_slice %140 {offsets = [0, 32], sizes = [8, 32], strides = [1, 1]} : vector<8x64xf32> to vector<8x32xf32>
    %cst_64 = arith.constant dense<0.000000e+00> : vector<2x32xf32>
    %191 = tpu.matmul %189, %190, %cst_64 {dimension_numbers = #tpu.dot_dimension_numbers<[1], [0], [0], [1], [0, 0, 1, 1], [], []>} : vector<2x8xf32>, vector<8x32xf32>, vector<2x32xf32> -> vector<2x32xf32>
    %c208 = arith.constant 208 : index
    %c0_65 = arith.constant 0 : index
    %192 = vector.load %arg1[%c208, %c0_65] : memref<384x128xf32, #tpu.memory_space<vmem>>, vector<2x8xf32>
    %c16 = arith.constant 16 : index
    %c0_66 = arith.constant 0 : index
    %193 = vector.load %arg0[%c16, %c0_66] : memref<24x128xf32, #tpu.memory_space<vmem>>, vector<2x1xf32>
    %c192 = arith.constant 192 : index
    %c0_67 = arith.constant 0 : index
    %194 = vector.load %arg1[%c192, %c0_67] : memref<384x128xf32, #tpu.memory_space<vmem>>, vector<1x8xf32>
    %195 = vector.broadcast %193 : vector<2x1xf32> to vector<2x8xf32>
    %196 = vector.broadcast %194 : vector<1x8xf32> to vector<2x8xf32>
    %197 = arith.mulf %195, %196 : vector<2x8xf32>
    %c200 = arith.constant 200 : index
    %c0_68 = arith.constant 0 : index
    %198 = vector.load %arg1[%c200, %c0_68] : memref<384x128xf32, #tpu.memory_space<vmem>>, vector<1x8xf32>
    %199 = vector.broadcast %198 : vector<1x8xf32> to vector<2x8xf32>
    %200 = arith.addf %197, %199 : vector<2x8xf32>
    %201 = vector.extract_strided_slice %192 {offsets = [0, 0], sizes = [1, 8], strides = [1, 1]} : vector<2x8xf32> to vector<1x8xf32>
    %202 = vector.extract_strided_slice %192 {offsets = [1, 0], sizes = [1, 8], strides = [1, 1]} : vector<2x8xf32> to vector<1x8xf32>
    %cst_69 = arith.constant dense<0.000000e+00> : vector<2xf32>
    %203 = vector.multi_reduction <add>, %200, %cst_69 [1] : vector<2x8xf32> to vector<2xf32>
    %204 = vector.shape_cast %203 : vector<2xf32> to vector<2x1xf32>
    %cst_70 = arith.constant 8.000000e+00 : f32
    %205 = vector.broadcast %cst_70 : f32 to vector<2x1xf32>
    %206 = arith.divf %204, %205 : vector<2x1xf32>
    %207 = vector.broadcast %206 : vector<2x1xf32> to vector<2x8xf32>
    %208 = arith.subf %200, %207 : vector<2x8xf32>
    %209 = arith.mulf %208, %208 : vector<2x8xf32>
    %cst_71 = arith.constant dense<0.000000e+00> : vector<2xf32>
    %210 = vector.multi_reduction <add>, %209, %cst_71 [1] : vector<2x8xf32> to vector<2xf32>
    %211 = vector.shape_cast %210 : vector<2xf32> to vector<2x1xf32>
    %cst_72 = arith.constant 8.000000e+00 : f32
    %212 = vector.broadcast %cst_72 : f32 to vector<2x1xf32>
    %213 = arith.divf %211, %212 : vector<2x1xf32>
    %214 = vector.broadcast %206 : vector<2x1xf32> to vector<2x8xf32>
    %215 = arith.subf %200, %214 : vector<2x8xf32>
    %cst_73 = arith.constant 9.99999974E-6 : f32
    %216 = vector.broadcast %cst_73 : f32 to vector<2x1xf32>
    %217 = arith.addf %213, %216 : vector<2x1xf32>
    %218 = math.rsqrt %217 : vector<2x1xf32>
    %219 = vector.broadcast %218 : vector<2x1xf32> to vector<2x8xf32>
    %220 = arith.mulf %215, %219 : vector<2x8xf32>
    %221 = vector.broadcast %201 : vector<1x8xf32> to vector<2x8xf32>
    %222 = arith.mulf %220, %221 : vector<2x8xf32>
    %223 = vector.broadcast %202 : vector<1x8xf32> to vector<2x8xf32>
    %224 = arith.addf %222, %223 : vector<2x8xf32>
    %cst_74 = arith.constant 0.000000e+00 : f32
    %225 = vector.broadcast %cst_74 : f32 to vector<2x8xf32>
    %226 = arith.maximumf %224, %225 : vector<2x8xf32>
    %c216 = arith.constant 216 : index
    %c0_75 = arith.constant 0 : index
    %227 = vector.load %arg1[%c216, %c0_75] : memref<384x128xf32, #tpu.memory_space<vmem>>, vector<8x8xf32>
    %cst_76 = arith.constant dense<0.000000e+00> : vector<2x8xf32>
    %228 = tpu.matmul %226, %227, %cst_76 {dimension_numbers = #tpu.dot_dimension_numbers<[1], [0], [0], [1], [0, 0, 1, 1], [], []>} : vector<2x8xf32>, vector<8x8xf32>, vector<2x8xf32> -> vector<2x8xf32>
    %c224 = arith.constant 224 : index
    %c0_77 = arith.constant 0 : index
    %229 = vector.load %arg1[%c224, %c0_77] : memref<384x128xf32, #tpu.memory_space<vmem>>, vector<1x8xf32>
    %230 = vector.broadcast %229 : vector<1x8xf32> to vector<2x8xf32>
    %231 = arith.addf %228, %230 : vector<2x8xf32>
    %cst_78 = arith.constant 0.000000e+00 : f32
    %232 = vector.broadcast %cst_78 : f32 to vector<2x8xf32>
    %233 = arith.maximumf %231, %232 : vector<2x8xf32>
    %234 = tpu.concatenate %5, %191, %233 in 1 : vector<2x32xf32>, vector<2x32xf32>, vector<2x8xf32> -> vector<2x72xf32>
    %c232 = arith.constant 232 : index
    %c0_79 = arith.constant 0 : index
    %235 = vector.load %arg1[%c232, %c0_79] : memref<384x128xf32, #tpu.memory_space<vmem>>, vector<72x32xf32>
    %cst_80 = arith.constant dense<0.000000e+00> : vector<2x32xf32>
    %236 = tpu.matmul %234, %235, %cst_80 {dimension_numbers = #tpu.dot_dimension_numbers<[1], [0], [0], [1], [0, 0, 1, 1], [], []>} : vector<2x72xf32>, vector<72x32xf32>, vector<2x32xf32> -> vector<2x32xf32>
    %c304 = arith.constant 304 : index
    %c0_81 = arith.constant 0 : index
    %237 = vector.load %arg1[%c304, %c0_81] : memref<384x128xf32, #tpu.memory_space<vmem>>, vector<1x32xf32>
    %238 = vector.broadcast %237 : vector<1x32xf32> to vector<2x32xf32>
    %239 = arith.addf %236, %238 : vector<2x32xf32>
    %c312 = arith.constant 312 : index
    %c0_82 = arith.constant 0 : index
    %240 = vector.load %arg1[%c312, %c0_82] : memref<384x128xf32, #tpu.memory_space<vmem>>, vector<4x32xf32>
    %241 = vector.extract_strided_slice %240 {offsets = [2, 0], sizes = [1, 32], strides = [1, 1]} : vector<4x32xf32> to vector<1x32xf32>
    %242 = vector.broadcast %241 : vector<1x32xf32> to vector<2x32xf32>
    %243 = arith.subf %239, %242 : vector<2x32xf32>
    %244 = vector.extract_strided_slice %240 {offsets = [3, 0], sizes = [1, 32], strides = [1, 1]} : vector<4x32xf32> to vector<1x32xf32>
    %cst_83 = arith.constant 9.99999974E-6 : f32
    %245 = vector.broadcast %cst_83 : f32 to vector<1x32xf32>
    %246 = arith.addf %244, %245 : vector<1x32xf32>
    %247 = math.rsqrt %246 : vector<1x32xf32>
    %248 = vector.broadcast %247 : vector<1x32xf32> to vector<2x32xf32>
    %249 = arith.mulf %243, %248 : vector<2x32xf32>
    %250 = vector.extract_strided_slice %240 {offsets = [0, 0], sizes = [1, 32], strides = [1, 1]} : vector<4x32xf32> to vector<1x32xf32>
    %251 = vector.broadcast %250 : vector<1x32xf32> to vector<2x32xf32>
    %252 = arith.mulf %249, %251 : vector<2x32xf32>
    %253 = vector.extract_strided_slice %240 {offsets = [1, 0], sizes = [1, 32], strides = [1, 1]} : vector<4x32xf32> to vector<1x32xf32>
    %254 = vector.broadcast %253 : vector<1x32xf32> to vector<2x32xf32>
    %255 = arith.addf %252, %254 : vector<2x32xf32>
    %cst_84 = arith.constant 0.000000e+00 : f32
    %256 = vector.broadcast %cst_84 : f32 to vector<2x32xf32>
    %257 = arith.maximumf %255, %256 : vector<2x32xf32>
    %c320 = arith.constant 320 : index
    %c0_85 = arith.constant 0 : index
    %258 = vector.load %arg1[%c320, %c0_85] : memref<384x128xf32, #tpu.memory_space<vmem>>, vector<32x16xf32>
    %cst_86 = arith.constant dense<0.000000e+00> : vector<2x16xf32>
    %259 = tpu.matmul %257, %258, %cst_86 {dimension_numbers = #tpu.dot_dimension_numbers<[1], [0], [0], [1], [0, 0, 1, 1], [], []>} : vector<2x32xf32>, vector<32x16xf32>, vector<2x16xf32> -> vector<2x16xf32>
    %c352 = arith.constant 352 : index
    %c0_87 = arith.constant 0 : index
    %260 = vector.load %arg1[%c352, %c0_87] : memref<384x128xf32, #tpu.memory_space<vmem>>, vector<1x16xf32>
    %261 = vector.broadcast %260 : vector<1x16xf32> to vector<2x16xf32>
    %262 = arith.addf %259, %261 : vector<2x16xf32>
    %c360 = arith.constant 360 : index
    %c0_88 = arith.constant 0 : index
    %263 = vector.load %arg1[%c360, %c0_88] : memref<384x128xf32, #tpu.memory_space<vmem>>, vector<4x16xf32>
    %264 = vector.extract_strided_slice %263 {offsets = [2, 0], sizes = [1, 16], strides = [1, 1]} : vector<4x16xf32> to vector<1x16xf32>
    %265 = vector.broadcast %264 : vector<1x16xf32> to vector<2x16xf32>
    %266 = arith.subf %262, %265 : vector<2x16xf32>
    %267 = vector.extract_strided_slice %263 {offsets = [3, 0], sizes = [1, 16], strides = [1, 1]} : vector<4x16xf32> to vector<1x16xf32>
    %cst_89 = arith.constant 9.99999974E-6 : f32
    %268 = vector.broadcast %cst_89 : f32 to vector<1x16xf32>
    %269 = arith.addf %267, %268 : vector<1x16xf32>
    %270 = math.rsqrt %269 : vector<1x16xf32>
    %271 = vector.broadcast %270 : vector<1x16xf32> to vector<2x16xf32>
    %272 = arith.mulf %266, %271 : vector<2x16xf32>
    %273 = vector.extract_strided_slice %263 {offsets = [0, 0], sizes = [1, 16], strides = [1, 1]} : vector<4x16xf32> to vector<1x16xf32>
    %274 = vector.broadcast %273 : vector<1x16xf32> to vector<2x16xf32>
    %275 = arith.mulf %272, %274 : vector<2x16xf32>
    %276 = vector.extract_strided_slice %263 {offsets = [1, 0], sizes = [1, 16], strides = [1, 1]} : vector<4x16xf32> to vector<1x16xf32>
    %277 = vector.broadcast %276 : vector<1x16xf32> to vector<2x16xf32>
    %278 = arith.addf %275, %277 : vector<2x16xf32>
    %cst_90 = arith.constant 0.000000e+00 : f32
    %279 = vector.broadcast %cst_90 : f32 to vector<2x16xf32>
    %280 = arith.maximumf %278, %279 : vector<2x16xf32>
    %c368 = arith.constant 368 : index
    %c0_91 = arith.constant 0 : index
    %281 = vector.load %arg1[%c368, %c0_91] : memref<384x128xf32, #tpu.memory_space<vmem>>, vector<1x16xf32>
    %282 = vector.broadcast %281 : vector<1x16xf32> to vector<2x16xf32>
    %283 = arith.mulf %280, %282 : vector<2x16xf32>
    %cst_92 = arith.constant dense<0.000000e+00> : vector<2xf32>
    %284 = vector.multi_reduction <add>, %283, %cst_92 [1] : vector<2x16xf32> to vector<2xf32>
    %285 = vector.shape_cast %284 : vector<2xf32> to vector<2x1xf32>
    %c376 = arith.constant 376 : index
    %c0_93 = arith.constant 0 : index
    %286 = vector.load %arg1[%c376, %c0_93] : memref<384x128xf32, #tpu.memory_space<vmem>>, vector<1x1xf32>
    %287 = vector.broadcast %286 : vector<1x1xf32> to vector<2x1xf32>
    %288 = arith.addf %285, %287 : vector<2x1xf32>
    %cst_94 = arith.constant 0.000000e+00 : f32
    %289 = vector.broadcast %cst_94 : f32 to vector<2x47xf32>
    %290 = tpu.concatenate %288, %189, %234, %289 in 1 : vector<2x1xf32>, vector<2x8xf32>, vector<2x72xf32>, vector<2x47xf32> -> vector<2x128xf32>
    %c0_95 = arith.constant 0 : index
    %c0_96 = arith.constant 0 : index
    %291 = vector.load %arg4[%c0_95, %c0_96] : memref<2x128xf32, #tpu.memory_space<vmem>>, vector<2x128xf32>
    tpu.vector_store %arg4[%c0_95, %c0_96], %290 {strides = array<i32>} : memref<2x128xf32, #tpu.memory_space<vmem>>, vector<2x128xf32>,
    return
  }
}

</mosaic_0001>

<bundles_post_ra>
// kernel: forward.1
= control target key start
LH: loop header
LB: loop body
LE: loop exit
PB: predicated region body
PF: predicated region fallthrough
CT: control target
= control target key end

     0   :  { %9 = vsyncpa [#allocation3], 0  ;;  %s1561_s18 = smov [#allocation2]   ;;  %s1562_s20 = smov 128   ;;  %s1853_s0 = inlined_call_operand.vmem [shape: f32[24,128], index: 0, kind: input, shape index: {}]   ;;  %s1854_s1 = inlined_call_operand.hbm [shape: f32[384,128], index: 1, kind: input, shape index: {}]   ;;  %s1855_s2 = inlined_call_operand.vmem [shape: f32[14,8,8], index: 2, kind: input, shape index: {}]   ;;  %s1856_s3 = inlined_call_operand.vmem [shape: f32[6,4,8], index: 3, kind: input, shape index: {}]   ;;  %s1857_s4 = inlined_call_operand.vmem [shape: f32[2,128], index: 4, kind: output, shape index: {}]  }
   0x1   :  { %s16_s17 = sshll.u32 %s1854_s1, 4  ;;  %s18_s19 = sshll.u32 %s1561_s18, 4  ;;  %s17_s17 = int_to_ptr.hbm [resolvable:$true] %s16_s17  ;;  %s19_s19 = int_to_ptr.vmem [resolvable:$true] %s18_s19 }
   0x2   :  { %s1563_s21 = smov 8  }
   0x3   :  { %24 = dma.hbm_to_vmem [thread:$0]  %s17_s17, 6144, %s19_s19, [#allocation3], %s1562_s20, %s1562_s20, %s1563_s21  }
   0x4   :  { %1559 = dma.done.wait [#allocation3], 6144  }
   0x5   :  { %1560 = vsyncadd [#allocation3], 4294961152  ;;  %vm75_vm0 = vcmask 1043456   ;;  %vm71_vm1 = vcmask 31744   ;;  %v65_v0 = vld [vmem:[%s1856_s3] sm:$0xf] }
   0x6   :  { %v66_v1 = vld [vmem:[%s1856_s3 + $0x4] sm:$0xf]  ;;  %v64_v2 = vld [vmem:[%s1853_s0 + $0x8] sm:$0xff]  ;;  %1410 = vmatpush.msk.msra.mxu1 %vm75_vm0, %v65_v0  ;;  %v69_v4 = vld [vmem:[%s1856_s3 + $0x10] sm:$0xf]  ;;  %vm40_vm2 = vcmask 261120  }
   0x7   :  { %1412 = vmatpush.msk.msra.mxu2 %vm75_vm0, %v66_v1  ;;  %v67_v3 = vld [vmem:[%s1856_s3 + $0x8] sm:$0xf]  ;;  %v70_v5 = vld [vmem:[%s1856_s3 + $0x14] sm:$0xf]  ;;  %1411 = vmatmul.msk.f32.vlgmr.msra.gmra.mxu1 %vm71_vm1, %v64_v2  ;;  %v68_v6 = vld [vmem:[%s1856_s3 + $0xc] sm:$0xf] }
   0x8   :  { %1413 = vmatmul.msk.f32.vlgmr.msra.gmra.mxu2 %vm71_vm1, %v64_v2  ;;  %v37_v7 = vld [vmem:[#allocation2 + $0x18] sm:$0xff]  ;;  %1414 = vmatpush.msk.msrb.mxu1 %vm75_vm0, %v67_v3  ;;  %v36_v8 = vld [vmem:[#allocation2 + $0x10] sm:$0xff]  ;;  %v35_v9 = vld [vmem:[#allocation2 + $0x8] sm:$0xff]  ;;  %vm239_vm3 = vcmask 64512   ;;  %s1565_s10 = smov 96   ;;  %s1569_s12 = smov 32  }
   0x9   :  { %1418 = vmatpush.msk.msrb.mxu2 %vm75_vm0, %v69_v4  ;;  %1420 = vmatpush.msk.msra.mxu3 %vm75_vm0, %v70_v5  ;;  %v34_v10 = vld [vmem:[#allocation2] sm:$0xff]  ;;  %v214_v12 = vld [vmem:[#allocation2 + $0x30] sm:$0x3f]  ;;  %v258_v16 = vld [vmem:[#allocation2 + $0x28] sm:$0x3f]  ;;  %s1570_s13 = smov 9  }
   0xa   :  { %1416 = vmatpush.msk.msra.mxu1 %vm75_vm0, %v68_v6  ;;  %1421 = vmatmul.msk.f32.vlgmr.msra.gmra.mxu3 %vm71_vm1, %v64_v2  ;;  %v33_v11 = vld [vmem:[%s1853_s0] sm:$0x3]  ;;  %v216_v13 = vrot.slane %v214_v12, 1  ;;  %v220_v17 = vrot.slane %v214_v12, 5  ;;  %v260_v19 = vrot.slane %v258_v16, 1  ;;  %v219_v22 = vrot.slane %v214_v12, 4 }
   0xb   :  { %56 = vmatpush.msra.mxu0 %v37_v7  ;;  %v261_v24 = vrot.slane %v258_v16, 2  ;;  %v218_v27 = vrot.slane %v214_v12, 3  ;;  %v217_v31 = vrot.slane %v214_v12, 2  ;;  %v264_v33 = vrot.slane %v258_v16, 5  ;;  %v416_v50 = vld [vmem:[%s1855_s2 + $0x8] sm:$0xff]  ;;  %v1435_v59 = vld [vmem:[%s1855_s2 + $0x38] sm:$0xff] }
   0xc   :  { %v222_v15 = vperm.slane %v216_v13, 0  ;;  %v226_v21 = vperm.slane %v220_v17, 0  ;;  %v225_v29 = vperm.slane %v219_v22, 0  ;;  %v263_v35 = vrot.slane %v258_v16, 4  ;;  %v419_v60 = vld [vmem:[%s1855_s2 + $0x20] sm:$0xff]  ;;  %v420_v62 = vld [vmem:[%s1855_s2 + $0x28] sm:$0xff] }
   0xd   :  { %57 = vmatpush.msra.mxu0 %v36_v8  ;;  %v224_v30 = vperm.slane %v218_v27, 0  ;;  %v262_v38 = vrot.slane %v258_v16, 3  ;;  %v223_v40 = vperm.slane %v217_v31, 0  ;;  %v221_v43 = vperm.slane %v214_v12, 0  ;;  %v415_v63 = vld [vmem:[%s1855_s2] sm:$0xff]  ;;  %v418_v13 = vld [vmem:[%s1855_s2 + $0x18] sm:$0xff] }
   0xe   :  { %v417_v17 = vld [vmem:[%s1855_s2 + $0x10] sm:$0xff] }
   0xf   :  { %58 = vmatpush.msra.mxu0 %v35_v9  ;;  %1415 = vmatmul.msk.f32.vlgmr.msrb.gmra.mxu1 %vm71_vm1, %v64_v2 }
  0x10   :  { %1419 = vmatmul.msk.f32.vlgmr.msrb.gmra.mxu2 %vm71_vm1, %v64_v2 }
  0x11   :  { %59 = vmatpush.msra.mxu0 %v34_v10 }
  0x12   :  { %1409 = vmatmul.msk.f32.vlgmr.msra.gmra.mxu0 %vm40_vm2, %v33_v11 }
  0x17   :  { %1417 = vmatmul.msk.f32.vlgmr.msra.gmra.mxu1 %vm71_vm1, %v64_v2 }
  0x84   :  { %v96_v14 = vpop.f32.mrf.mxu1 }
  0x85   :  { %1422 = vmatpush.xpose.msk.msrb.mxu0 %vm239_vm3, %v96_v14  ;;  %v233_v45 = vmul.f32 %v221_v43, %v96_v14 }
  0x87   :  { %v240_v47 = vsel %vm239_vm3, %v233_v45, 0.0 }
  0x88   :  { %1423 = vmatmul.msk.f32.vlgmr.msrb.gmra.mxu0 %vm239_vm3, %v258_v16 }
  0x8b   :  { %v119_v18 = vpop.f32.mrf.mxu2 }
  0x8c   :  { %1424 = vmatpush.xpose.msk.msrb.mxu1 %vm239_vm3, %v119_v18  ;;  %v234_v20 = vmul.f32 %v222_v15, %v119_v18  ;;  %v142_v23 = vpop.f32.mrf.mxu1 }
  0x8d   :  { %1426 = vmatpush.xpose.msk.msra.mxu2 %vm239_vm3, %v142_v23  ;;  %v211_v26 = vpop.f32.mrf.mxu3  ;;  %v235_v44 = vmul.f32 %v223_v40, %v142_v23 }
  0x8e   :  { %v243_v25 = vsel %vm239_vm3, %v234_v20, 0.0  ;;  %v238_v28 = vmul.f32 %v226_v21, %v211_v26  ;;  %v1434_v20 = vld [vmem:[%s1855_s2 + $0x30] sm:$0xff] }
  0x8f   :  { %244 = vadd.xlane.f32.xlu0 %v243_v25  ;;  %1425 = vmatmul.msk.f32.vlgmr.msrb.gmra.mxu1 %vm239_vm3, %v260_v19  ;;  %v246_v46 = vsel %vm239_vm3, %v235_v44, 0.0  ;;  %v1655_v48 = vpop.f32.mrf.mxu0  ;;  %v1439_v19 = vld [vmem:[%s1855_s2 + $0x58] sm:$0xff] }
  0x90   :  { %1432 = vmatpush.xpose.msk.msra.mxu1 %vm239_vm3, %v211_v26  ;;  %1427 = vmatmul.msk.f32.vlgmr.msra.gmra.mxu2 %vm239_vm3, %v261_v24  ;;  %v255_v34 = vsel %vm239_vm3, %v238_v28, 0.0 }
  0x91   :  { %651 = vmatpush.msrb.mxu2 %v96_v14 }
  0x93   :  { %v188_v32 = vpop.f32.mrf.mxu2 }
  0x94   :  { %1430 = vmatpush.xpose.msk.msra.mxu0 %vm239_vm3, %v188_v32  ;;  %v237_v36 = vmul.f32 %v225_v29, %v188_v32  ;;  %743 = vmatpush.msra.mxu2 %v188_v32  ;;  %v165_v37 = vpop.f32.mrf.mxu1 }
  0x95   :  { %1428 = vmatpush.xpose.msk.msrb.mxu3 %vm239_vm3, %v165_v37  ;;  %720 = vmatpush.msrb.mxu1 %v165_v37  ;;  %v236_v39 = vmul.f32 %v224_v30, %v165_v37 }
  0x96   :  { %v252_v41 = vsel %vm239_vm3, %v237_v36, 0.0 }
  0x97   :  { %256 = vadd.xlane.f32.xlu0 %v255_v34  ;;  %1433 = vmatmul.msk.f32.vlgmr.msra.gmra.mxu1 %vm239_vm3, %v264_v33  ;;  %v249_v42 = vsel %vm239_vm3, %v236_v39, 0.0  ;;  %v1438_v34 = vld [vmem:[%s1855_s2 + $0x50] sm:$0xff] }
  0x98   :  { %697 = vmatpush.msrb.mxu0 %v142_v23  ;;  %1429 = vmatmul.msk.f32.vlgmr.msrb.gmra.mxu3 %vm239_vm3, %v262_v38 }
  0x99   :  { %674 = vmatpush.msra.mxu3 %v119_v18  ;;  %1431 = vmatmul.msk.f32.vlgmr.msra.gmra.mxu0 %vm239_vm3, %v263_v35 }
  0x9a   :  { %250 = vadd.xlane.f32.xlu1 %v249_v42  ;;  %253 = vadd.xlane.f32.xlu2 %v252_v41  ;;  %v1437_v41 = vld [vmem:[%s1855_s2 + $0x48] sm:$0xff] }
  0x9b   :  { %766 = vmatpush.msrb.mxu3 %v211_v26 }
  0x9f   :  { %247 = vadd.xlane.f32.xlu0 %v246_v46 }
  0xa2   :  { %241 = vadd.xlane.f32.xlu1 %v240_v47 }
 0x102   :  { %v245_v49 = vpop.xlane.xlu0 %244 }
 0x103   :  { %v422_v54 = vadd.f32 %v416_v50, %v245_v49  ;;  %v1436_v49 = vld [vmem:[%s1855_s2 + $0x40] sm:$0xff] }
 0x105   :  { %v287_v51 = vpop.f32.mrf.mxu0 }
 0x106   :  { %v427_v2 = vperm.slane %v287_v51, 0 }
 0x10a   :  { %v257_v57 = vpop.xlane.xlu0 %256 }
 0x10b   :  { %v426_v5 = vadd.f32 %v420_v62, %v257_v57 }
 0x10c   :  { %v312_v52 = vpop.f32.mrf.mxu1 }
 0x10d   :  { %v251_v53 = vpop.xlane.xlu1 %250  ;;  %v428_v55 = vperm.slane %v312_v52, 0  ;;  %v254_v61 = vpop.xlane.xlu2 %253 }
 0x10e   :  { %v425_v4 = vadd.f32 %v419_v60, %v254_v61  ;;  %v424_v26 = vadd.f32 %v418_v13, %v251_v53 }
 0x10f   :  { %v434_v56 = vadd.f32 %v428_v55, %v422_v54 }
 0x111   :  { %v446_v58 = vmul.f32 0.2, %v434_v56  ;;  %vm440_vm4 = vcmp.gt.f32.partialorder %v434_v56, 0.0 }
 0x112   :  { %v248_v21 = vpop.xlane.xlu0 %247 }
 0x113   :  { %v452_v0 = vsel %vm440_vm4, %v434_v56, %v446_v58  ;;  %v337_v14 = vpop.f32.mrf.mxu2  ;;  %v423_v30 = vadd.f32 %v417_v17, %v248_v21 }
 0x114   :  { %v412_v1 = vpop.f32.mrf.mxu1  ;;  %v465_v3 = vadd.f32 %v1435_v59, %v452_v0  ;;  %v429_v24 = vperm.slane %v337_v14, 0 }
 0x115   :  { %v432_v6 = vperm.slane %v412_v1, 0  ;;  %v242_v7 = vpop.xlane.xlu1 %241 }
 0x116   :  { %v387_v8 = vpop.f32.mrf.mxu0  ;;  %v421_v9 = vadd.f32 %v415_v63, %v242_v7  ;;  %v473_v10 = vsel %vm239_vm3, %v465_v3, -inf  ;;  %v435_v36 = vadd.f32 %v429_v24, %v423_v30 }
 0x117   :  { %v431_v11 = vperm.slane %v387_v8, 0  ;;  %v438_v12 = vadd.f32 %v432_v6, %v426_v5  ;;  %474 = vmax.xlane.f32.xlu2 %v473_v10 }
 0x118   :  { %v433_v15 = vadd.f32 %v427_v2, %v421_v9  ;;  %v447_v42 = vmul.f32 0.2, %v435_v36  ;;  %vm441_vm9 = vcmp.gt.f32.partialorder %v435_v36, 0.0 }
 0x119   :  { %v437_v16 = vadd.f32 %v431_v11, %v425_v4  ;;  %v450_v18 = vmul.f32 0.2, %v438_v12  ;;  %vm444_vm5 = vcmp.gt.f32.partialorder %v438_v12, 0.0 }
 0x11a   :  { %v445_v22 = vmul.f32 0.2, %v433_v15  ;;  %vm439_vm6 = vcmp.gt.f32.partialorder %v433_v15, 0.0  ;;  %v453_v47 = vsel %vm441_vm9, %v435_v36, %v447_v42 }
 0x11b   :  { %v449_v23 = vmul.f32 0.2, %v437_v16  ;;  %vm443_vm7 = vcmp.gt.f32.partialorder %v437_v16, 0.0  ;;  %v456_v25 = vsel %vm444_vm5, %v438_v12, %v450_v18  ;;  %v362_v27 = vpop.f32.mrf.mxu3  ;;  %v466_v50 = vadd.f32 %v1436_v49, %v453_v47 }
 0x11c   :  { %v469_v28 = vadd.f32 %v1439_v19, %v456_v25  ;;  %v451_v29 = vsel %vm439_vm6, %v433_v15, %v445_v22  ;;  %v430_v31 = vperm.slane %v362_v27, 0 }
 0x11d   :  { %v464_v32 = vadd.f32 %v1434_v20, %v451_v29  ;;  %v455_v33 = vsel %vm443_vm7, %v437_v16, %v449_v23  ;;  %v476_v51 = vsel %vm239_vm3, %v466_v50, -inf }
 0x11e   :  { %v485_v35 = vsel %vm239_vm3, %v469_v28, -inf  ;;  %v436_v37 = vadd.f32 %v430_v31, %v424_v26  ;;  %v468_v39 = vadd.f32 %v1438_v34, %v455_v33 }
 0x11f   :  { %486 = vmax.xlane.f32.xlu1 %v485_v35  ;;  %v470_v38 = vsel %vm239_vm3, %v464_v32, -inf }
 0x120   :  { %471 = vmax.xlane.f32.xlu0 %v470_v38  ;;  %v448_v40 = vmul.f32 0.2, %v436_v37  ;;  %vm442_vm8 = vcmp.gt.f32.partialorder %v436_v37, 0.0  ;;  %v482_v45 = vsel %vm239_vm3, %v468_v39, -inf }
 0x122   :  { %v454_v43 = vsel %vm442_vm8, %v436_v37, %v448_v40 }
 0x123   :  { %v467_v44 = vadd.f32 %v1437_v41, %v454_v43 }
 0x125   :  { %v479_v46 = vsel %vm239_vm3, %v467_v44, -inf }
 0x126   :  { %480 = vmax.xlane.f32.xlu2 %v479_v46  ;;  %v905_v46 = vld [vmem:[#allocation2 + $0x80] sm:$0xff] }
 0x127   :  { %483 = vmax.xlane.f32.xlu1 %v482_v45 }
 0x12e   :  { %477 = vmax.xlane.f32.xlu2 %v476_v51 }
 0x18a   :  { %v475_v52 = vpop.xlane.xlu2 %474 }
 0x18b   :  { %v489_v53 = vsub.f32 %v465_v3, %v475_v52  ;;  %v904_v52 = vld [vmem:[#allocation2 + $0x78] sm:$0xff] }
 0x18d   :  { %v496_v54 = vmul.f32 1.442695, %v489_v53 }
 0x18f   :  { %1483 = vpow2.f32 %v496_v54 }
 0x192   :  { %v487_v55 = vpop.xlane.xlu1 %486 }
 0x193   :  { %v493_v56 = vsub.f32 %v469_v28, %v487_v55  ;;  %v472_v57 = vpop.xlane.xlu0 %471 }
 0x194   :  { %v488_v58 = vsub.f32 %v464_v32, %v472_v57 }
 0x195   :  { %v1699_v59 = vpop.eup %1483  ;;  %v504_v60 = vmul.f32 1.442695, %v493_v56 }
 0x196   :  { %v494_v61 = vmul.f32 1.442695, %v488_v58  ;;  %v509_v62 = vsel %vm239_vm3, %v1699_v59, 0.0 }
 0x197   :  { %1485 = vpow2.f32 %v504_v60  ;;  %510 = vadd.xlane.f32.xlu0 %v509_v62  ;;  %v903_v60 = vld [vmem:[#allocation2 + $0x70] sm:$0xff] }
 0x198   :  { %1487 = vpow2.f32 %v494_v61 }
 0x199   :  { %v481_v63 = vpop.xlane.xlu2 %480 }
 0x19a   :  { %v484_v0 = vpop.xlane.xlu1 %483  ;;  %v491_v1 = vsub.f32 %v467_v44, %v481_v63 }
 0x19b   :  { %v492_v2 = vsub.f32 %v468_v39, %v484_v0 }
 0x19c   :  { %v500_v4 = vmul.f32 1.442695, %v491_v1 }
 0x19d   :  { %v1703_v3 = vpop.eup %1485  ;;  %v502_v5 = vmul.f32 1.442695, %v492_v2 }
 0x19e   :  { %v1705_v6 = vpop.eup %1487  ;;  %v521_v7 = vsel %vm239_vm3, %v1703_v3, 0.0  ;;  %1489 = vpow2.f32 %v500_v4  ;;  %v902_v4 = vld [vmem:[#allocation2 + $0x68] sm:$0xff] }
 0x19f   :  { %v506_v8 = vsel %vm239_vm3, %v1705_v6, 0.0  ;;  %522 = vadd.xlane.f32.xlu1 %v521_v7  ;;  %1491 = vpow2.f32 %v502_v5 }
 0x1a0   :  { %507 = vadd.xlane.f32.xlu0 %v506_v8 }
 0x1a1   :  { %v478_v9 = vpop.xlane.xlu2 %477 }
 0x1a2   :  { %v490_v10 = vsub.f32 %v466_v50, %v478_v9 }
 0x1a4   :  { %v1711_v11 = vpop.eup %1489  ;;  %v498_v12 = vmul.f32 1.442695, %v490_v10 }
 0x1a5   :  { %v1713_v13 = vpop.eup %1491  ;;  %v515_v14 = vsel %vm239_vm3, %v1711_v11, 0.0 }
 0x1a6   :  { %1493 = vpow2.f32 %v498_v12  ;;  %516 = vadd.xlane.f32.xlu2 %v515_v14  ;;  %v518_v15 = vsel %vm239_vm3, %v1713_v13, 0.0 }
 0x1a7   :  { %519 = vadd.xlane.f32.xlu1 %v518_v15 }
 0x1ac   :  { %v1719_v16 = vpop.eup %1493 }
 0x1ad   :  { %v512_v17 = vsel %vm239_vm3, %v1719_v16, 0.0 }
 0x1ae   :  { %513 = vadd.xlane.f32.xlu2 %v512_v17 }
 0x20a   :  { %v511_v18 = vpop.xlane.xlu0 %510 }
 0x20b   :  { %1495 = vrcp.f32 %v511_v18  ;;  %v550_v25 = vand.u32 2147483648, %v511_v18  ;;  %v548_v26 = vand.u32 2147483647, %v511_v18  ;;  %vm544_vm11 = vweird.f32 %v511_v18 }
 0x20d   :  { %v551_v31 = vor.u32 1.1754944e-38, %v550_v25  ;;  %vm549_vm13 = vcmp.eq.f32.partialorder %v548_v26, 8.507059e+37 }
 0x211   :  { %v1496_v19 = vpop.eup %1495 }
 0x212   :  { %v540_v20 = vmul.f32 %v1496_v19, %v511_v18  ;;  %v523_v21 = vpop.xlane.xlu1 %522  ;;  %vm545_vm10 = vweird.f32 %v1496_v19 }
 0x213   :  { %v508_v22 = vpop.xlane.xlu0 %507  ;;  %1497 = vrcp.f32 %v523_v21  ;;  %vm546_vm12 = vmor %vm544_vm11, %vm545_vm10  ;;  %v610_v39 = vand.u32 2147483648, %v523_v21  ;;  %v608_v42 = vand.u32 2147483647, %v523_v21  ;;  %vm604_vm0 = vweird.f32 %v523_v21 }
 0x214   :  { %v541_v23 = vsub.f32 1.0, %v540_v20  ;;  %1499 = vrcp.f32 %v508_v22  ;;  %v535_v40 = vand.u32 2147483648, %v508_v22  ;;  %v533_v44 = vand.u32 2147483647, %v508_v22 }
 0x215   :  { %vm529_vm1 = vweird.f32 %v508_v22  ;;  %v611_v51 = vor.u32 1.1754944e-38, %v610_v39  ;;  %vm609_vm6 = vcmp.eq.f32.partialorder %v608_v42, 8.507059e+37 }
 0x216   :  { %v542_v24 = vmul.f32 %v1496_v19, %v541_v23  ;;  %v536_v53 = vor.u32 1.1754944e-38, %v535_v40  ;;  %vm534_vm7 = vcmp.eq.f32.partialorder %v533_v44, 8.507059e+37 }
 0x218   :  { %v543_v27 = vadd.f32 %v1496_v19, %v542_v24 }
 0x219   :  { %v1498_v28 = vpop.eup %1497  ;;  %v1723_v33 = vpop.xlane.xlu2 %516 }
 0x21a   :  { %v1500_v29 = vpop.eup %1499  ;;  %v547_v30 = vsel %vm546_vm12, %v1496_v19, %v543_v27  ;;  %v600_v32 = vmul.f32 %v1498_v28, %v523_v21  ;;  %1501 = vrcp.f32 %v1723_v33  ;;  %v1726_v35 = vpop.xlane.xlu1 %519  ;;  %vm605_vm14 = vweird.f32 %v1498_v28  ;;  %v1471_v19 = vld [vmem:[#allocation2 + $0x20] ss:$0 sm:$0xff] }
 0x21b   :  { %v525_v34 = vmul.f32 %v1500_v29, %v508_v22  ;;  %v552_v36 = vsel %vm549_vm13, %v551_v31, %v547_v30  ;;  %1503 = vrcp.f32 %v1726_v35  ;;  %vm530_vm15 = vweird.f32 %v1500_v29  ;;  %vm606_vm4 = vmor %vm604_vm0, %vm605_vm14 }
 0x21c   :  { %v601_v37 = vsub.f32 1.0, %v600_v32  ;;  %v553_v45 = vmul.f32 %v1699_v59, %v552_v36  ;;  %vm531_vm5 = vmor %vm529_vm1, %vm530_vm15  ;;  %v580_v0 = vand.u32 2147483648, %v1723_v33  ;;  %v578_v7 = vand.u32 2147483647, %v1723_v33 }
 0x21d   :  { %v526_v38 = vsub.f32 1.0, %v525_v34  ;;  %vm574_vm9 = vweird.f32 %v1723_v33  ;;  %v595_v9 = vand.u32 2147483648, %v1726_v35  ;;  %vm589_vm12 = vweird.f32 %v1726_v35 }
 0x21e   :  { %v602_v41 = vmul.f32 %v1498_v28, %v601_v37  ;;  %1441 = vmatmul.msk.f32.vlgmr.msra.gmra.mxu3 %vm239_vm3, %v553_v45  ;;  %v581_v14 = vor.u32 1.1754944e-38, %v580_v0  ;;  %vm579_vm13 = vcmp.eq.f32.partialorder %v578_v7, 8.507059e+37  ;;  %v1747_v30 = vadd.f32 %v1471_v19, %v1655_v48 }
 0x21f   :  { %v527_v43 = vmul.f32 %v1500_v29, %v526_v38  ;;  %923 = vmatpush.msra.mxu3 %v905_v46  ;;  %v596_v21 = vor.u32 1.1754944e-38, %v595_v9  ;;  %v1564_v9 = vmov 32.0  }
 0x220   :  { %v603_v47 = vadd.f32 %v1498_v28, %v602_v41  ;;  %v1502_v49 = vpop.eup %1501 }
 0x221   :  { %v528_v50 = vadd.f32 %v1500_v29, %v527_v43  ;;  %v570_v55 = vmul.f32 %v1502_v49, %v1723_v33  ;;  %v514_v56 = vpop.xlane.xlu2 %513  ;;  %v1504_v57 = vpop.eup %1503  ;;  %924 = vmatpush.msra.mxu3 %v904_v52  ;;  %vm575_vm8 = vweird.f32 %v1502_v49 }
 0x222   :  { %v607_v54 = vsel %vm606_vm4, %v1498_v28, %v603_v47  ;;  %1505 = vrcp.f32 %v514_v56  ;;  %v585_v63 = vmul.f32 %v1504_v57, %v1726_v35  ;;  %vm590_vm10 = vweird.f32 %v1504_v57  ;;  %vm576_vm11 = vmor %vm574_vm9, %vm575_vm8 }
 0x223   :  { %v532_v58 = vsel %vm531_vm5, %v1500_v29, %v528_v50  ;;  %v612_v59 = vsel %vm609_vm6, %v611_v51, %v607_v54  ;;  %v571_v62 = vsub.f32 1.0, %v570_v55  ;;  %925 = vmatpush.msra.mxu3 %v903_v60  ;;  %vm591_vm14 = vmor %vm589_vm12, %vm590_vm10  ;;  %v565_v26 = vand.u32 2147483648, %v514_v56  ;;  %v1472_v50 = vld [vmem:[#allocation2 + $0x88] ss:$0 sm:$0xff]  ;;  %v782_v54 = vld [vmem:[#allocation2 + $0x40] sm:$0xff] }
 0x224   :  { %v537_v61 = vsel %vm534_vm7, %v536_v53, %v532_v58  ;;  %v613_v2 = vmul.f32 %v1703_v3, %v612_v59  ;;  %v586_v8 = vsub.f32 1.0, %v585_v63  ;;  %v563_v28 = vand.u32 2147483647, %v514_v56 }
 0x225   :  { %v538_v1 = vmul.f32 %v1705_v6, %v537_v61  ;;  %v572_v5 = vmul.f32 %v1502_v49, %v571_v62  ;;  %v593_v6 = vand.u32 2147483647, %v1726_v35  ;;  %926 = vmatpush.msra.mxu3 %v902_v4  ;;  %vm559_vm1 = vweird.f32 %v514_v56 }
 0x226   :  { %v587_v12 = vmul.f32 %v1504_v57, %v586_v8  ;;  %1445 = vmatmul.msk.f32.vlgmr.msrb.gmra.mxu3 %vm239_vm3, %v613_v2  ;;  %v566_v32 = vor.u32 1.1754944e-38, %v565_v26  ;;  %vm564_vm5 = vcmp.eq.f32.partialorder %v563_v28, 8.507059e+37  ;;  %vm931_vm6 = vcmask 254976  }
 0x227   :  { %1440 = vmatmul.msk.f32.vlgmr.msrb.gmra.mxu2 %vm239_vm3, %v538_v1  ;;  %v573_v10 = vadd.f32 %v1502_v49, %v572_v5  ;;  %vm594_vm15 = vcmp.eq.f32.partialorder %v593_v6, 8.507059e+37  ;;  %vm784_vm7 = vcmask 130048   ;;  %1507 = vrcp.f32 %v1564_v9 }
 0x228   :  { %v1506_v3 = vpop.eup %1505  ;;  %v588_v17 = vadd.f32 %v1504_v57, %v587_v12 }
 0x229   :  { %v577_v15 = vsel %vm576_vm11, %v1502_v49, %v573_v10  ;;  %v555_v18 = vmul.f32 %v1506_v3, %v514_v56  ;;  %vm560_vm0 = vweird.f32 %v1506_v3 }
 0x22a   :  { %v582_v20 = vsel %vm579_vm13, %v581_v14, %v577_v15  ;;  %v592_v22 = vsel %vm591_vm14, %v1504_v57, %v588_v17  ;;  %vm561_vm4 = vmor %vm559_vm1, %vm560_vm0 }
 0x22b   :  { %v556_v23 = vsub.f32 1.0, %v555_v18  ;;  %v583_v24 = vmul.f32 %v1711_v11, %v582_v20  ;;  %v597_v25 = vsel %vm594_vm15, %v596_v21, %v592_v22  ;;  %v1473_v22 = vld [vmem:[#allocation2 + $0x58] ss:$0 sm:$0xff] }
 0x22c   :  { %v598_v29 = vmul.f32 %v1713_v13, %v597_v25  ;;  %v614_v13 = vld [vmem:[#allocation2 + $0x38] sm:$0x3f] }
 0x22d   :  { %v557_v27 = vmul.f32 %v1506_v3, %v556_v23  ;;  %1443 = vmatmul.msk.f32.vlgmr.msrb.gmra.mxu1 %vm239_vm3, %v583_v24  ;;  %v616_v35 = vrot.slane %v614_v13, 1  ;;  %v618_v36 = vrot.slane %v614_v13, 3  ;;  %v620_v37 = vrot.slane %v614_v13, 5  ;;  %v1508_v10 = vpop.eup %1507  ;;  %v814_v24 = vld [vmem:[#allocation2 + $0x50] sm:$0x1] }
 0x22e   :  { %1452 = vmatmul.msk.f32.vlgmr.msra.gmra.mxu3 %vm40_vm2, %v1747_v30  ;;  %v617_v55 = vrot.slane %v614_v13, 2  ;;  %v621_v59 = vperm.slane %v614_v13, 0  ;;  %v619_v60 = vrot.slane %v614_v13, 4  ;;  %v936_v12 = vmul.f32 32.0, %v1508_v10 }
 0x22f   :  { %v558_v31 = vadd.f32 %v1506_v3, %v557_v27  ;;  %1444 = vmatmul.msk.f32.vlgmr.msra.gmra.mxu2 %vm239_vm3, %v598_v29  ;;  %v622_v38 = vperm.slane %v616_v35, 0  ;;  %v624_v39 = vperm.slane %v618_v36, 0  ;;  %v626_v40 = vperm.slane %v620_v37, 0  ;;  %v1449_v27 = vld [vmem:[%s1855_s2 + $0x60] sm:$0xff] }
 0x230   :  { %v623_v57 = vperm.slane %v617_v55, 0  ;;  %v625_v63 = vperm.slane %v619_v60, 0  ;;  %v937_v6 = vsub.f32 1.0, %v936_v12  ;;  %vm940_vm8 = vweird.f32 %v1508_v10  ;;  %v966_v60 = vld [vmem:[#allocation2 + $0x98] sm:$0xff] }
 0x231   :  { %v562_v11 = vsel %vm561_vm4, %v1506_v3, %v558_v31 }
 0x232   :  { %v567_v33 = vsel %vm564_vm5, %v566_v32, %v562_v11  ;;  %v938_v3 = vmul.f32 %v1508_v10, %v937_v6 }
 0x233   :  { %v568_v34 = vmul.f32 %v1719_v16, %v567_v33  ;;  %v783_v16 = vld [vmem:[#allocation2 + $0x48] sm:$0xff] }
 0x234   :  { %802 = vmatpush.msra.mxu0 %v783_v16  ;;  %v939_v14 = vadd.f32 %v1508_v10, %v938_v3 }
 0x235   :  { %1442 = vmatmul.msk.f32.vlgmr.msrb.gmra.mxu0 %vm239_vm3, %v568_v34  ;;  %v1450_v34 = vld [vmem:[%s1855_s2 + $0x68] sm:$0xff] }
 0x236   :  { %803 = vmatpush.msra.mxu0 %v782_v54  ;;  %v1760_v15 = vsel %vm940_vm8, %v1508_v10, %v939_v14 }
 0x2a1   :  { %v676_v48 = vpop.f32.mrf.mxu3 }
 0x2a2   :  { %v677_v42 = vadd.f32 %v676_v48, %v622_v38 }
 0x2a9   :  { %v768_v43 = vpop.f32.mrf.mxu3 }
 0x2aa   :  { %v722_v41 = vpop.f32.mrf.mxu1  ;;  %v769_v45 = vadd.f32 %v768_v43, %v626_v40  ;;  %v653_v56 = vpop.f32.mrf.mxu2 }
 0x2ab   :  { %v723_v44 = vadd.f32 %v722_v41, %v624_v39  ;;  %v654_v62 = vadd.f32 %v653_v56, %v621_v59 }
 0x2ad   :  { %v774_v46 = vadd.f32 %v723_v44, %v677_v42 }
 0x2af   :  { %v775_v47 = vadd.f32 %v774_v46, %v769_v45  ;;  %v968_v46 = vld [vmem:[#allocation2 + $0xa8] sm:$0xff] }
 0x2b0   :  { %986 = vmatpush.msrb.mxu0 %v968_v46 }
 0x2b1   :  { %v776_v49 = vmax.f32 %v775_v47, 0.0  ;;  %v928_v51 = vpop.f32.mrf.mxu3  ;;  %v967_v47 = vld [vmem:[#allocation2 + $0xa0] sm:$0xff] }
 0x2b2   :  { %v1755_v52 = vadd.f32 %v1472_v50, %v928_v51  ;;  %v699_v58 = vpop.f32.mrf.mxu0  ;;  %v745_v0 = vpop.f32.mrf.mxu2  ;;  %987 = vmatpush.msrb.mxu0 %v967_v47 }
 0x2b3   :  { %778 = vrot.lane.b32.xlu0 %v776_v49, %s1563_s21  ;;  %v700_v61 = vadd.f32 %v699_v58, %v623_v57  ;;  %v746_v2 = vadd.f32 %v745_v0, %v625_v63 }
 0x2b4   :  { %v932_v53 = vsel %vm931_vm6, %v1755_v52, 0.0  ;;  %v997_v36 = vmul.f32 0.1, %v1755_v52  ;;  %v995_v43 = vrot.slane %v1755_v52, 1  ;;  %988 = vmatpush.msrb.mxu0 %v966_v60 }
 0x2b5   :  { %v771_v1 = vadd.f32 %v700_v61, %v654_v62  ;;  %v965_v61 = vld [vmem:[#allocation2 + $0x90] sm:$0xff]  ;;  %v1474_v62 = vld [vmem:[#allocation2 + $0x60] ss:$0 sm:$0xff] }
 0x2b6   :  { %v1001_v37 = vperm.slane %v997_v36, 0  ;;  %v998_v44 = vmul.f32 0.1, %v995_v43  ;;  %989 = vmatpush.msrb.mxu0 %v965_v61 }
 0x2b7   :  { %v772_v4 = vadd.f32 %v771_v1, %v746_v2  ;;  %v1475_v1 = vld [vmem:[#allocation2 + $0xb0] ss:$0 sm:$0xff] }
 0x2b8   :  { %v1002_v45 = vperm.slane %v998_v44, 0 }
 0x2b9   :  { %v773_v5 = vmax.f32 %v772_v4, 0.0 }
 0x2dd   :  { %933 = vadd.xlane.f32.xlu0 %v932_v53 }
 0x325   :  { %v779_v7 = vpop.permute.xlu0 %778 }
 0x326   :  { %v781_v8 = vsel %vm239_vm3, %v773_v5, %v779_v7 }
 0x327   :  { %1446 = vmatmul.msk.f32.vlgmr.msra.gmra.mxu0 %vm784_vm7, %v781_v8 }
 0x350   :  { %v934_v17 = vpop.xlane.xlu0 %933 }
 0x351   :  { %v942_v18 = vmul.f32 %v1760_v15, %v934_v17 }
 0x353   :  { %v1764_v19 = vsub.f32 %v1755_v52, %v942_v18 }
 0x355   :  { %v944_v20 = vmul.f32 %v1764_v19, %v1764_v19 }
 0x357   :  { %v945_v21 = vsel %vm931_vm6, %v944_v20, 0.0 }
 0x358   :  { %946 = vadd.xlane.f32.xlu0 %v945_v21 }
 0x3a4   :  { %v805_v23 = vpop.f32.mrf.mxu0 }
 0x3a5   :  { %1447 = vmatpush.xpose.msk.msra.mxu1 %vm40_vm2, %v805_v23  ;;  %896 = vmatpush.msrb.mxu2 %v805_v23  ;;  %v810_v25 = vmul.f32 %v1473_v22, %v805_v23 }
 0x3a7   :  { %v811_v26 = vsel %vm40_vm2, %v810_v25, 0.0 }
 0x3a8   :  { %1448 = vmatmul.msk.f32.vlgmr.msra.gmra.mxu1 %vm40_vm2, %v814_v24  ;;  %812 = vadd.xlane.f32.xlu1 %v811_v26 }
 0x3cb   :  { %v947_v25 = vpop.xlane.xlu0 %946 }
 0x3cc   :  { %v948_v26 = vmul.f32 %v947_v25, %v1760_v15 }
 0x41b   :  { %v813_v28 = vpop.xlane.xlu1 %812 }
 0x41c   :  { %v843_v31 = vadd.f32 %v1449_v27, %v813_v28  ;;  %v949_v27 = vadd.f32 1e-05, %v948_v26 }
 0x41e   :  { %vm956_vm15 = vweird.f32 %v949_v27 }
 0x425   :  { %v838_v29 = vpop.f32.mrf.mxu1 }
 0x426   :  { %v844_v32 = vperm.slane %v838_v29, 0 }
 0x428   :  { %v845_v11 = vadd.f32 %v844_v32, %v843_v31 }
 0x42a   :  { %v847_v33 = vmul.f32 0.2, %v845_v11  ;;  %vm846_vm9 = vcmp.gt.f32.partialorder %v845_v11, 0.0 }
 0x42c   :  { %v848_v13 = vsel %vm846_vm9, %v845_v11, %v847_v33  ;;  %vm1083_vm9 = vcmask 1041409  }
 0x42d   :  { %v851_v35 = vadd.f32 %v1450_v34, %v848_v13 }
 0x42f   :  { %v852_v48 = vsel %vm239_vm3, %v851_v35, -inf }
 0x430   :  { %853 = vmax.xlane.f32.xlu2 %v852_v48 }
 0x448   :  { %1003 = vrot.lane.b32.xlu2 %v1001_v37, %s1565_s10 }
 0x4a3   :  { %v854_v38 = vpop.xlane.xlu2 %853 }
 0x4a4   :  { %v855_v39 = vsub.f32 %v851_v35, %v854_v38 }
 0x4a6   :  { %v856_v40 = vmul.f32 1.442695, %v855_v39  ;;  %v901_v39 = vld [vmem:[#allocation2 + $0xb8] sm:$0xf] }
 0x4a8   :  { %1509 = vpow2.f32 %v856_v40 }
 0x4ab   :  { %v1004_v5 = vpop.permute.xlu2 %1003 }
 0x4ae   :  { %v1510_v41 = vpop.eup %1509 }
 0x4af   :  { %v858_v42 = vsel %vm239_vm3, %v1510_v41, 0.0 }
 0x4b0   :  { %859 = vadd.xlane.f32.xlu1 %v858_v42  ;;  %v961_v42 = vperm.slane %v901_v39, 0 }
 0x4c9   :  { %1005 = vrot.lane.b32.xlu1 %v1002_v45, %s1565_s10 }
 0x523   :  { %v860_v49 = vpop.xlane.xlu1 %859 }
 0x524   :  { %1511 = vrcp.f32 %v860_v49  ;;  %v872_v53 = vand.u32 2147483648, %v860_v49  ;;  %v870_v55 = vand.u32 2147483647, %v860_v49  ;;  %vm866_vm11 = vweird.f32 %v860_v49 }
 0x525   :  { %1513 = vrsqrt.f32 %v949_v27 }
 0x526   :  { %v873_v52 = vor.u32 1.1754944e-38, %v872_v53  ;;  %vm871_vm13 = vcmp.eq.f32.partialorder %v870_v55, 8.507059e+37 }
 0x52a   :  { %v1512_v16 = vpop.eup %1511 }
 0x52b   :  { %v862_v50 = vmul.f32 %v1512_v16, %v860_v49  ;;  %vm867_vm10 = vweird.f32 %v1512_v16  ;;  %v1514_v28 = vpop.eup %1513  ;;  %v963_v49 = vperm.slane %v901_v39, 1 }
 0x52c   :  { %vm868_vm12 = vmor %vm866_vm11, %vm867_vm10  ;;  %v951_v29 = vmul.f32 %v1514_v28, %v949_v27  ;;  %vm957_vm14 = vweird.f32 %v1514_v28  ;;  %vm1086_vm10 = vcmask 58368  }
 0x52d   :  { %v863_v51 = vsub.f32 1.0, %v862_v50  ;;  %vm958_vm0 = vmor %vm956_vm15, %vm957_vm14 }
 0x52e   :  { %v952_v31 = vmul.f32 %v1514_v28, %v951_v29 }
 0x52f   :  { %v864_v54 = vmul.f32 %v1512_v16, %v863_v51 }
 0x530   :  { %v953_v32 = vmul.f32 0.5, %v952_v31 }
 0x531   :  { %v865_v56 = vadd.f32 %v1512_v16, %v864_v54 }
 0x532   :  { %v954_v11 = vsub.f32 1.5, %v953_v32 }
 0x533   :  { %v869_v57 = vsel %vm868_vm12, %v1512_v16, %v865_v56 }
 0x534   :  { %v874_v58 = vsel %vm871_vm13, %v873_v52, %v869_v57  ;;  %v955_v37 = vmul.f32 %v1514_v28, %v954_v11 }
 0x535   :  { %v875_v59 = vmul.f32 %v1510_v41, %v874_v58 }
 0x536   :  { %v959_v38 = vsel %vm958_vm0, %v1514_v28, %v955_v37 }
 0x537   :  { %1451 = vmatmul.msk.f32.vlgmr.msrb.gmra.mxu2 %vm239_vm3, %v875_v59  ;;  %v960_v41 = vmul.f32 %v959_v38, %v1764_v19  ;;  %v1055_v19 = vperm.slane %v901_v39, 2  ;;  %v1058_v59 = vperm.slane %v901_v39, 3 }
 0x53b   :  { %v1006_v7 = vpop.permute.xlu1 %1005 }
 0x5ba   :  { %v898_v63 = vpop.f32.mrf.mxu2 }
 0x5bb   :  { %v899_v0 = vadd.f32 %v1474_v62, %v898_v63 }
 0x5bd   :  { %1453 = vmatmul.msk.f32.vlgmr.msrb.gmra.mxu0 %vm40_vm2, %v899_v0 }
 0x63a   :  { %v991_v2 = vpop.f32.mrf.mxu0 }
 0x63b   :  { %v1786_v4 = vadd.f32 %v1475_v1, %v991_v2 }
 0x63d   :  { %v1009_v8 = vadd.f32 %v1004_v5, %v1786_v4  ;;  %v1010_v9 = vadd.f32 %v1006_v7, %v1786_v4 }
 0x63f   :  { %v1011_v10 = vsel %vm40_vm2, %v1009_v8, 0.0  ;;  %v1014_v12 = vsel %vm40_vm2, %v1010_v9, 0.0 }
 0x640   :  { %1012 = vadd.xlane.f32.xlu2 %v1011_v10  ;;  %1015 = vadd.xlane.f32.xlu1 %v1014_v12  ;;  %v1189_v12 = vld [vmem:[%s1853_s0 + $0x10] sm:$0x3]  ;;  %s1568_s0 = smov 64  }
 0x6b3   :  { %v1013_v6 = vpop.xlane.xlu2 %1012  ;;  %v1016_v3 = vpop.xlane.xlu1 %1015 }
 0x6b4   :  { %v1017_v14 = vmul.f32 %v1013_v6, %v1760_v15  ;;  %v1018_v17 = vmul.f32 %v1016_v3, %v1760_v15  ;;  %v1566_v6 = vmov 0   ;;  %v1079_v3 = vlaneseq }
 0x6b5   :  { %1468 = vset.pattern.permute.xlu0 %v1566_v6  ;;  %1470 = vset.pattern.permute.xlu1 %v1566_v6 }
 0x6b6   :  { %v1019_v18 = vsub.f32 %v1009_v8, %v1017_v14  ;;  %v1020_v20 = vsub.f32 %v1010_v9, %v1018_v17  ;;  %1469 = vset.pattern.permute.xlu2 %v1566_v6  ;;  %v1805_v14 = vand.u32 127, %v1079_v3 }
 0x6b8   :  { %v1022_v21 = vmul.f32 %v1020_v20, %v1020_v20  ;;  %v1021_v22 = vmul.f32 %v1019_v18, %v1019_v18 }
 0x6ba   :  { %v1026_v23 = vsel %vm40_vm2, %v1022_v21, 0.0  ;;  %v1023_v24 = vsel %vm40_vm2, %v1021_v22, 0.0 }
 0x6bb   :  { %1027 = vadd.xlane.f32.xlu2 %v1026_v23  ;;  %1024 = vadd.xlane.f32.xlu0 %v1023_v24 }
 0x72e   :  { %v1028_v33 = vpop.xlane.xlu2 %1027  ;;  %v1025_v34 = vpop.xlane.xlu0 %1024 }
 0x72f   :  { %v1030_v13 = vmul.f32 %v1028_v33, %v1760_v15  ;;  %v1029_v35 = vmul.f32 %v1025_v34, %v1760_v15  ;;  %v962_v15 = vmul.f32 %v961_v42, %v960_v41 }
 0x731   :  { %v1032_v48 = vadd.f32 1e-05, %v1030_v13  ;;  %v1031_v36 = vadd.f32 1e-05, %v1029_v35  ;;  %v964_v54 = vadd.f32 %v963_v49, %v962_v15  ;;  %v1476_v13 = vld [vmem:[#allocation2 + $0xc0] ss:$0 sm:$0xff] }
 0x733   :  { %1515 = vrsqrt.f32 %v1032_v48  ;;  %vm1049_vm5 = vweird.f32 %v1032_v48  ;;  %vm1039_vm7 = vweird.f32 %v1031_v36  ;;  %v1062_v60 = vrot.slane %v964_v54, 1 }
 0x734   :  { %1517 = vrsqrt.f32 %v1031_v36  ;;  %v1063_v5 = vperm.slane %v964_v54, 0 }
 0x735   :  { %v1064_v1 = vperm.slane %v1062_v60, 0 }
 0x739   :  { %v1516_v40 = vpop.eup %1515 }
 0x73a   :  { %v1518_v43 = vpop.eup %1517  ;;  %v1044_v44 = vmul.f32 %v1516_v40, %v1032_v48  ;;  %vm1050_vm1 = vweird.f32 %v1516_v40 }
 0x73b   :  { %v1034_v45 = vmul.f32 %v1518_v43, %v1031_v36  ;;  %vm1040_vm4 = vweird.f32 %v1518_v43  ;;  %vm1051_vm6 = vmor %vm1049_vm5, %vm1050_vm1  ;;  %v1477_v36 = vld [vmem:[#allocation2 + $0xc8] ss:$0 sm:$0xff] }
 0x73c   :  { %v1045_v46 = vmul.f32 %v1516_v40, %v1044_v44  ;;  %vm1041_vm8 = vmor %vm1039_vm7, %vm1040_vm4 }
 0x73d   :  { %v1035_v47 = vmul.f32 %v1518_v43, %v1034_v45  ;;  %v1567_v45 = vmov 8.0  }
 0x73e   :  { %v1046_v16 = vmul.f32 0.5, %v1045_v46 }
 0x73f   :  { %v1036_v50 = vmul.f32 0.5, %v1035_v47 }
 0x740   :  { %v1047_v51 = vsub.f32 1.5, %v1046_v16 }
 0x741   :  { %v1037_v53 = vsub.f32 1.5, %v1036_v50 }
 0x742   :  { %v1048_v55 = vmul.f32 %v1516_v40, %v1047_v51 }
 0x743   :  { %v1038_v56 = vmul.f32 %v1518_v43, %v1037_v53 }
 0x744   :  { %v1052_v52 = vsel %vm1051_vm6, %v1516_v40, %v1048_v55 }
 0x745   :  { %v1042_v57 = vsel %vm1041_vm8, %v1518_v43, %v1038_v56  ;;  %v1054_v58 = vmul.f32 %v1052_v52, %v1020_v20 }
 0x746   :  { %v1053_v61 = vmul.f32 %v1042_v57, %v1019_v18 }
 0x747   :  { %v1057_v62 = vmul.f32 %v1055_v19, %v1054_v58 }
 0x748   :  { %v1056_v63 = vmul.f32 %v1055_v19, %v1053_v61 }
 0x749   :  { %v1060_v0 = vadd.f32 %v1058_v59, %v1057_v62 }
 0x74a   :  { %v1059_v2 = vadd.f32 %v1058_v59, %v1056_v63 }
 0x74b   :  { %v1068_v7 = vmul.f32 %v1064_v1, %v1060_v0 }
 0x74c   :  { %v1067_v8 = vmul.f32 %v1063_v5, %v1059_v2 }
 0x74d   :  { %v1072_v9 = vsel %vm40_vm2, %v1068_v7, 0.0 }
 0x74e   :  { %1073 = vadd.xlane.f32.xlu2 %v1072_v9  ;;  %v1069_v10 = vsel %vm40_vm2, %v1067_v8, 0.0 }
 0x74f   :  { %1070 = vadd.xlane.f32.xlu0 %v1069_v10 }
 0x763   :  { %1193 = vperm.xlu0 %1468, %v1189_v12  }
 0x7c1   :  { %v1074_v17 = vpop.xlane.xlu2 %1073 }
 0x7c2   :  { %v1076_v18 = vmul.f32 0.17677669, %v1074_v17  ;;  %v1071_v20 = vpop.xlane.xlu0 %1070 }
 0x7c3   :  { %v1075_v21 = vmul.f32 0.17677669, %v1071_v20 }
 0x7c4   :  { %v1082_v22 = vperm.slane %v1076_v18, %v1805_v14 }
 0x7c5   :  { %v1081_v23 = vperm.slane %v1075_v21, %v1805_v14 }
 0x7c7   :  { %v1084_v24 = vsel %vm1083_vm9, %v1082_v22, %v1081_v23  ;;  %v1235_v22 = vld [vmem:[#allocation2 + $0xd8] sm:$0xff] }
 0x7c8   :  { %v1087_v25 = vsel %vm1086_vm10, %v1084_v24, -inf  ;;  %1256 = vmatpush.msra.mxu2 %v1235_v22 }
 0x7c9   :  { %1088 = vmax.xlane.f32.xlu1 %v1087_v25 }
 0x7d5   :  { %v1194_v35 = vpop.permute.xlu0 %1193 }
 0x7d6   :  { %v1197_v48 = vmul.f32 %v1476_v13, %v1194_v35 }
 0x7d8   :  { %v1200_v37 = vadd.f32 %v1477_v36, %v1197_v48 }
 0x7da   :  { %v1201_v38 = vsel %vm1086_vm10, %v1200_v37, 0.0 }
 0x83c   :  { %v1089_v26 = vpop.xlane.xlu1 %1088 }
 0x83d   :  { %v1091_v27 = vperm.slane %v1089_v26, 0  ;;  %v1092_v28 = vperm.slane %v1089_v26, 1 }
 0x83f   :  { %v1095_v29 = vsub.f32 %v1075_v21, %v1091_v27  ;;  %v1096_v31 = vsub.f32 %v1076_v18, %v1092_v28 }
 0x841   :  { %v1097_v32 = vmul.f32 1.442695, %v1095_v29  ;;  %v1099_v11 = vmul.f32 1.442695, %v1096_v31  ;;  %v1188_v31 = vld [vmem:[#allocation2 + $0xd0] sm:$0x3] }
 0x842   :  { %v1232_v48 = vperm.slane %v1188_v31, 1 }
 0x843   :  { %1519 = vpow2.f32 %v1097_v32 }
 0x844   :  { %1521 = vpow2.f32 %v1099_v11 }
 0x845   :  { %1523 = vrcp.f32 %v1567_v45 }
 0x849   :  { %v1811_v33 = vpop.eup %1519 }
 0x84a   :  { %v1813_v34 = vpop.eup %1521  ;;  %1104 = vperm.xlu2 %1469, %v1811_v33  }
 0x84b   :  { %1107 = vperm.xlu1 %1470, %v1813_v34   ;;  %v1524_v46 = vpop.eup %1523 }
 0x84c   :  { %v1205_v47 = vmul.f32 8.0, %v1524_v46  ;;  %vm1209_vm11 = vweird.f32 %v1524_v46 }
 0x84e   :  { %v1206_v15 = vsub.f32 1.0, %v1205_v47 }
 0x850   :  { %v1207_v49 = vmul.f32 %v1524_v46, %v1206_v15 }
 0x852   :  { %v1208_v16 = vadd.f32 %v1524_v46, %v1207_v49  ;;  %v1281_v49 = vld [vmem:[#allocation2 + $0x128] sm:$0xff] }
 0x853   :  { %1295 = vmatpush.msrb.mxu3 %v1281_v49 }
 0x854   :  { %v1210_v50 = vsel %vm1209_vm11, %v1524_v46, %v1208_v16  ;;  %v1280_v16 = vld [vmem:[#allocation2 + $0x120] sm:$0xff] }
 0x855   :  { %1296 = vmatpush.msrb.mxu3 %v1280_v16  ;;  %v1389_v16 = vadd.s32 4294967295, %v1805_v14 }
 0x873   :  { %1202 = vadd.xlane.f32.xlu2 %v1201_v38 }
 0x8a4   :  { %v1105_v39 = vpop.permute.xlu2 %1104 }
 0x8a5   :  { %v1109_v41 = vperm.slane %v1105_v39, %v1805_v14 }
 0x8bd   :  { %v1108_v40 = vpop.permute.xlu1 %1107 }
 0x8be   :  { %v1110_v42 = vperm.slane %v1108_v40, %v1805_v14 }
 0x8c0   :  { %v1111_v43 = vsel %vm1083_vm9, %v1110_v42, %v1109_v41 }
 0x8c1   :  { %v1113_v44 = vsel %vm1086_vm10, %v1111_v43, 0.0 }
 0x8c2   :  { %1114 = vadd.xlane.f32.xlu1 %v1113_v44  ;;  %v1478_v44 = vld [vmem:[#allocation2 + $0xe0] ss:$0 sm:$0xff] }
 0x8e6   :  { %v1203_v51 = vpop.xlane.xlu2 %1202 }
 0x8e7   :  { %v1211_v53 = vmul.f32 %v1210_v50, %v1203_v51  ;;  %v1278_v51 = vld [vmem:[#allocation2 + $0x110] sm:$0xff] }
 0x8e9   :  { %v1822_v54 = vsub.f32 %v1200_v37, %v1211_v53  ;;  %v1277_v53 = vld [vmem:[#allocation2 + $0x108] sm:$0xff] }
 0x8eb   :  { %v1213_v55 = vmul.f32 %v1822_v54, %v1822_v54 }
 0x8ed   :  { %v1214_v56 = vsel %vm1086_vm10, %v1213_v55, 0.0  ;;  %v1275_v55 = vld [vmem:[#allocation2 + $0xf8] sm:$0xff]  ;;  %vm1284_vm10 = vcmask 588800  }
 0x8ee   :  { %1215 = vadd.xlane.f32.xlu0 %v1214_v56  ;;  %v1274_v56 = vld [vmem:[#allocation2 + $0xf0] sm:$0xff] }
 0x902   :  { %1163 = vrot.lane.b32.xlu0 %v1786_v4, %s1565_s10 }
 0x935   :  { %v1115_v19 = vpop.xlane.xlu1 %1114 }
 0x936   :  { %v1117_v52 = vperm.slane %v1115_v19, 0  ;;  %v1118_v57 = vperm.slane %v1115_v19, 1  ;;  %v1273_v19 = vld [vmem:[#allocation2 + $0xe8] sm:$0xff] }
 0x938   :  { %1525 = vrcp.f32 %v1117_v52  ;;  %v1132_v0 = vand.u32 2147483648, %v1117_v52  ;;  %v1147_v1 = vand.u32 2147483648, %v1118_v57  ;;  %v1130_v5 = vand.u32 2147483647, %v1117_v52 }
 0x939   :  { %1527 = vrcp.f32 %v1118_v57  ;;  %v1145_v8 = vand.u32 2147483647, %v1118_v57  ;;  %vm1126_vm14 = vweird.f32 %v1117_v52  ;;  %vm1141_vm15 = vweird.f32 %v1118_v57 }
 0x93a   :  { %v1133_v10 = vor.u32 1.1754944e-38, %v1132_v0  ;;  %v1148_v12 = vor.u32 1.1754944e-38, %v1147_v1  ;;  %vm1131_vm4 = vcmp.eq.f32.partialorder %v1130_v5, 8.507059e+37  ;;  %v1331_v0 = vld [vmem:[#allocation2 + $0x150] sm:$0xff]  ;;  %v1330_v1 = vld [vmem:[#allocation2 + $0x148] sm:$0xff]  ;;  %v1329_v5 = vld [vmem:[#allocation2 + $0x140] sm:$0xff] }
 0x93b   :  { %vm1146_vm5 = vcmp.eq.f32.partialorder %v1145_v8, 8.507059e+37 }
 0x93e   :  { %v1526_v58 = vpop.eup %1525 }
 0x93f   :  { %v1528_v59 = vpop.eup %1527  ;;  %v1122_v60 = vmul.f32 %v1526_v58, %v1117_v52  ;;  %vm1127_vm12 = vweird.f32 %v1526_v58 }
 0x940   :  { %v1137_v61 = vmul.f32 %v1528_v59, %v1118_v57  ;;  %vm1142_vm13 = vweird.f32 %v1528_v59  ;;  %vm1128_vm0 = vmor %vm1126_vm14, %vm1127_vm12 }
 0x941   :  { %v1123_v62 = vsub.f32 1.0, %v1122_v60  ;;  %vm1143_vm1 = vmor %vm1141_vm15, %vm1142_vm13  ;;  %v1308_v60 = vld [vmem:[#allocation2 + $0x138] sm:$0xf] }
 0x942   :  { %v1138_v63 = vsub.f32 1.0, %v1137_v61  ;;  %v1311_v61 = vadd.f32 1e-05, %v1308_v60  ;;  %v1326_v22 = vperm.slane %v1308_v60, 1 }
 0x943   :  { %v1124_v2 = vmul.f32 %v1526_v58, %v1123_v62  ;;  %v1332_v62 = vld [vmem:[#allocation2 + $0x158] sm:$0xff] }
 0x944   :  { %v1139_v7 = vmul.f32 %v1528_v59, %v1138_v63  ;;  %1350 = vmatpush.msra.mxu0 %v1332_v62  ;;  %vm1318_vm11 = vweird.f32 %v1311_v61 }
 0x945   :  { %v1125_v4 = vadd.f32 %v1526_v58, %v1124_v2 }
 0x946   :  { %v1140_v9 = vadd.f32 %v1528_v59, %v1139_v7  ;;  %1351 = vmatpush.msra.mxu0 %v1331_v0 }
 0x947   :  { %v1129_v6 = vsel %vm1128_vm0, %v1526_v58, %v1125_v4 }
 0x948   :  { %v1144_v3 = vsel %vm1143_vm1, %v1528_v59, %v1140_v9  ;;  %v1134_v17 = vsel %vm1131_vm4, %v1133_v10, %v1129_v6  ;;  %1352 = vmatpush.msra.mxu0 %v1330_v1  ;;  %v1479_v9 = vld [vmem:[#allocation2 + $0x130] ss:$0 sm:$0xff]  ;;  %vm1397_vm1 = vcmask 7168   ;;  %vm1399_vm4 = vcmask 72704  }
 0x949   :  { %v1149_v18 = vsel %vm1146_vm5, %v1148_v12, %v1144_v3  ;;  %v1135_v20 = vmul.f32 %v1811_v33, %v1134_v17  ;;  %v1230_v33 = vperm.slane %v1188_v31, 0  ;;  %v1309_v12 = vperm.slane %v1308_v60, 2 }
 0x94a   :  { %v1150_v21 = vmul.f32 %v1813_v34, %v1149_v18  ;;  %1353 = vmatpush.msra.mxu0 %v1329_v5  ;;  %vm1401_vm5 = vcmask 662528  }
 0x94b   :  { %1154 = vperm.xlu2 %1469, %v1135_v20   ;;  %v1324_v20 = vperm.slane %v1308_v60, 0 }
 0x94c   :  { %1157 = vperm.xlu1 %1470, %v1150_v21  }
 0x961   :  { %v1216_v23 = vpop.xlane.xlu0 %1215 }
 0x962   :  { %v1217_v24 = vmul.f32 %v1216_v23, %v1210_v50  ;;  %v1279_v50 = vld [vmem:[#allocation2 + $0x118] sm:$0xff] }
 0x963   :  { %1297 = vmatpush.msrb.mxu3 %v1279_v50  ;;  %v1482_v50 = vld [vmem:[#allocation2 + $0x178] ss:$0 sm:$0xff] }
 0x964   :  { %v1218_v25 = vadd.f32 1e-05, %v1217_v24 }
 0x965   :  { %1298 = vmatpush.msrb.mxu3 %v1278_v51 }
 0x966   :  { %1529 = vrsqrt.f32 %v1218_v25  ;;  %vm1225_vm7 = vweird.f32 %v1218_v25 }
 0x967   :  { %1299 = vmatpush.msrb.mxu3 %v1277_v53  ;;  %1531 = vrsqrt.f32 %v1311_v61 }
 0x96c   :  { %v1530_v26 = vpop.eup %1529 }
 0x96d   :  { %v1220_v27 = vmul.f32 %v1530_v26, %v1218_v25  ;;  %vm1226_vm6 = vweird.f32 %v1530_v26  ;;  %v1532_v63 = vpop.eup %1531 }
 0x96e   :  { %vm1227_vm8 = vmor %vm1225_vm7, %vm1226_vm6  ;;  %v1313_v2 = vmul.f32 %v1532_v63, %v1311_v61  ;;  %vm1319_vm12 = vweird.f32 %v1532_v63 }
 0x96f   :  { %v1221_v28 = vmul.f32 %v1530_v26, %v1220_v27  ;;  %vm1320_vm13 = vmor %vm1318_vm11, %vm1319_vm12 }
 0x970   :  { %v1314_v7 = vmul.f32 %v1532_v63, %v1313_v2 }
 0x971   :  { %v1222_v29 = vmul.f32 0.5, %v1221_v28 }
 0x972   :  { %v1315_v8 = vmul.f32 0.5, %v1314_v7 }
 0x973   :  { %v1223_v32 = vsub.f32 1.5, %v1222_v29 }
 0x974   :  { %v1164_v11 = vpop.permute.xlu0 %1163 }
 0x975   :  { %v1224_v13 = vmul.f32 %v1530_v26, %v1223_v32  ;;  %1183 = vmatpush.msrb.mxu1 %v1164_v11 }
 0x977   :  { %v1228_v34 = vsel %vm1227_vm8, %v1530_v26, %v1224_v13  ;;  %v1358_v26 = vld [vmem:[#allocation2 + $0x168] sm:$0xf] }
 0x978   :  { %v1229_v35 = vmul.f32 %v1228_v34, %v1822_v54  ;;  %v1276_v54 = vld [vmem:[#allocation2 + $0x100] sm:$0xff]  ;;  %v1361_v27 = vadd.f32 1e-05, %v1358_v26 }
 0x979   :  { %1300 = vmatpush.msrb.mxu3 %v1276_v54 }
 0x97a   :  { %v1231_v36 = vmul.f32 %v1230_v33, %v1229_v35  ;;  %1533 = vrsqrt.f32 %v1361_v27  ;;  %vm1368_vm14 = vweird.f32 %v1361_v27  ;;  %v1480_v33 = vld [vmem:[#allocation2 + $0x160] ss:$0 sm:$0xff]  ;;  %v1359_v35 = vperm.slane %v1358_v26, 2 }
 0x97b   :  { %1301 = vmatpush.msrb.mxu3 %v1275_v55 }
 0x97c   :  { %v1233_v37 = vadd.f32 %v1232_v48, %v1231_v36 }
 0x97d   :  { %1302 = vmatpush.msrb.mxu3 %v1274_v56 }
 0x97e   :  { %v1234_v38 = vmax.f32 %v1233_v37, 0.0 }
 0x97f   :  { %1303 = vmatpush.msrb.mxu3 %v1273_v19 }
 0x980   :  { %1455 = vmatmul.msk.f32.vlgmr.msra.gmra.mxu2 %vm239_vm3, %v1234_v38  ;;  %v1534_v28 = vpop.eup %1533 }
 0x981   :  { %v1363_v29 = vmul.f32 %v1534_v28, %v1361_v27  ;;  %vm1369_vm15 = vweird.f32 %v1534_v28 }
 0x982   :  { %vm1370_vm0 = vmor %vm1368_vm14, %vm1369_vm15 }
 0x983   :  { %v1364_v31 = vmul.f32 %v1534_v28, %v1363_v29 }
 0x985   :  { %v1365_v32 = vmul.f32 0.5, %v1364_v31 }
 0x987   :  { %v1366_v11 = vsub.f32 1.5, %v1365_v32 }
 0x989   :  { %v1367_v13 = vmul.f32 %v1534_v28, %v1366_v11 }
 0x98b   :  { %v1371_v34 = vsel %vm1370_vm0, %v1534_v28, %v1367_v13 }
 0x98c   :  { %v1372_v37 = vperm.slane %v1371_v34, 3 }
 0x9a5   :  { %v1833_v39 = vpop.permute.xlu2 %1154 }
 0x9a6   :  { %v1159_v41 = vperm.slane %v1833_v39, %v1805_v14  ;;  %v1390_v53 = vperm.slane %v1833_v39, %v1389_v16 }
 0x9be   :  { %v1835_v40 = vpop.permute.xlu1 %1157 }
 0x9bf   :  { %v1160_v42 = vperm.slane %v1835_v40, %v1805_v14  ;;  %v1391_v51 = vperm.slane %v1835_v40, %v1389_v16 }
 0x9c1   :  { %v1161_v43 = vsel %vm1083_vm9, %v1160_v42, %v1159_v41  ;;  %v1374_v41 = vperm.slane %v1358_v26, 0  ;;  %v1392_v56 = vsel %vm1083_vm9, %v1391_v51, %v1390_v53 }
 0x9c2   :  { %1454 = vmatmul.msk.f32.vlgmr.msrb.gmra.mxu1 %vm239_vm3, %v1161_v43  ;;  %vm1271_vm3 = vcmask 523264   ;;  %v1376_v43 = vperm.slane %v1358_v26, 1 }
 0xa03   :  { %v1258_v45 = vpop.f32.mrf.mxu2 }
 0xa04   :  { %v1259_v46 = vadd.f32 %v1478_v44, %v1258_v45 }
 0xa06   :  { %v1261_v47 = vmax.f32 %v1259_v46, 0.0  ;;  %v1481_v46 = vld [vmem:[#allocation2 + $0x170] ss:$0 sm:$0xff] }
 0xa08   :  { %1267 = vrot.lane.b32.xlu1 %v1261_v47, %s1568_s0 }
 0xa3f   :  { %v1185_v15 = vpop.f32.mrf.mxu1 }
 0xa40   :  { %1263 = vrot.lane.b32.xlu2 %v1185_v15, %s1569_s12 }
 0xa7a   :  { %v1268_v57 = vpop.permute.xlu1 %1267 }
 0xa9a   :  { %v1264_v52 = vpop.permute.xlu2 %1263 }
 0xa9b   :  { %v1270_v58 = vsel %vm40_vm2, %v1747_v30, %v1264_v52  ;;  %v1316_v30 = vsub.f32 1.5, %v1315_v8 }
 0xa9c   :  { %v1272_v59 = vsel %vm1271_vm3, %v1270_v58, %v1268_v57 }
 0xa9d   :  { %1394 = vrot.lane.b32.xlu0 %v1272_v59, %s1570_s13  ;;  %1456 = vmatmul.msk.f32.vlgmr.msrb.gmra.mxu3 %vm1284_vm10, %v1272_v59  ;;  %v1317_v4 = vmul.f32 %v1532_v63, %v1316_v30 }
 0xa9f   :  { %v1321_v10 = vsel %vm1320_vm13, %v1532_v63, %v1317_v4 }
 0xaa0   :  { %v1322_v17 = vperm.slane %v1321_v10, 3 }
 0xb0f   :  { %v1395_v19 = vpop.permute.xlu0 %1394 }
 0xb20   :  { %v1305_v6 = vpop.f32.mrf.mxu3 }
 0xb21   :  { %v1306_v3 = vadd.f32 %v1479_v9, %v1305_v6 }
 0xb23   :  { %v1310_v18 = vsub.f32 %v1306_v3, %v1309_v12 }
 0xb25   :  { %v1323_v21 = vmul.f32 %v1322_v17, %v1310_v18 }
 0xb27   :  { %v1325_v23 = vmul.f32 %v1324_v20, %v1323_v21 }
 0xb29   :  { %v1327_v24 = vadd.f32 %v1326_v22, %v1325_v23 }
 0xb2b   :  { %v1328_v25 = vmax.f32 %v1327_v24, 0.0 }
 0xb2d   :  { %1457 = vmatmul.msk.f32.vlgmr.msra.gmra.mxu0 %vm40_vm2, %v1328_v25  ;;  %vm1382_vm2 = vcmask 123904  }
 0xbaa   :  { %v1355_v48 = vpop.f32.mrf.mxu0 }
 0xbab   :  { %v1356_v36 = vadd.f32 %v1480_v33, %v1355_v48 }
 0xbad   :  { %v1360_v38 = vsub.f32 %v1356_v36, %v1359_v35 }
 0xbaf   :  { %v1373_v42 = vmul.f32 %v1372_v37, %v1360_v38 }
 0xbb1   :  { %v1375_v44 = vmul.f32 %v1374_v41, %v1373_v42 }
 0xbb3   :  { %v1377_v45 = vadd.f32 %v1376_v43, %v1375_v44 }
 0xbb5   :  { %v1378_v47 = vmax.f32 %v1377_v45, 0.0 }
 0xbb7   :  { %v1381_v15 = vmul.f32 %v1481_v46, %v1378_v47 }
 0xbb9   :  { %v1383_v49 = vsel %vm1382_vm2, %v1381_v15, 0.0 }
 0xbba   :  { %1384 = vadd.xlane.f32.xlu2 %v1383_v49 }
 0xc2d   :  { %v1385_v54 = vpop.xlane.xlu2 %1384 }
 0xc2e   :  { %v1388_v55 = vadd.f32 %v1482_v50, %v1385_v54 }
 0xc30   :  { %v1398_v52 = vsel %vm1397_vm1, %v1388_v55, %v1392_v56 }
 0xc31   :  { %v1400_v57 = vsel %vm1399_vm4, %v1398_v52, %v1395_v19 }
 0xc32   :  { %v1402_v58 = vsel %vm1401_vm5, %v1400_v57, 0.0 }
 0xc33   :  { %1403 = vst [vmem:[%s1857_s4] sm:$0x3] %v1402_v58 }
 0xc34   :  { %1408 = vsyncpa [#allocation3], 1 }

</bundles_post_ra>
